<compile_context>
chip_gen: v7x
topology: tpu7x:2x2x1
jax: 0.10.0
libtpu: 0.0.40
codegen_flags: <defaults>
</compile_context>

<pallas_src>
import functools

import jax
import jax.numpy as jnp
from jax.experimental import pallas as pl
from jax.experimental.pallas import tpu as pltpu

NEG_SLOPE = 0.1
BN_EPS = 1e-4
PAD_L = 8   # left x-pad columns in the mid scratch -> interior stores sublane-aligned (f32)
PAD_R = 8   # right x-pad columns (only column PAD_L+W is read; 8 keeps the pad store aligned)


def _leaky(y):
    return jnp.where(y > 0, y, NEG_SLOPE * y)


def _scratch_w(W):
    return PAD_L + W + PAD_R


# ---------------------------------------------------------------------------
# Fused kernel: one (batch image, H-strip) per grid step.
#   x_ref  : (1, TH, W, Cin)  f32   strip of the input (also the residual)
#   xt_ref : (1, 1, W, Cin)   f32   row just above the strip (clamped at top)
#   xb_ref : (1, 1, W, Cin)   f32   row just below the strip (clamped at bottom)
#   w1_ref : (Cin, Cmid)      bf16  1x1 conv weight
#   w3_ref : (9, Cmid, Cin)   bf16  3x3 conv taps, t = ky*3 + kx
#   s1/b1  : (1, Cmid) f32, s2/b2: (1, Cin) f32   folded BN scale/shift
#   o_ref  : (1, TH, W, Cin)  f32
#   midp_ref: VMEM (TH+2, PAD_L+W+PAD_R, Cmid) f32   padded CBL_1 output
# ---------------------------------------------------------------------------
def _fused_residual_kernel(x_ref, xt_ref, xb_ref, w1_ref, w3_ref,
                           s1_ref, b1_ref, s2_ref, b2_ref,
                           o_ref, midp_ref, *, TH, W, Cin, Cmid):
    s = pl.program_id(1)
    n_strips = pl.num_programs(1)
    # Halo rows are zero-padding at the image top/bottom boundary.
    m_top = (s > 0).astype(jnp.float32)
    m_bot = (s < n_strips - 1).astype(jnp.float32)

    w1 = w1_ref[...]          # (Cin, Cmid) bf16
    scale1 = s1_ref[...]      # (1, Cmid)  f32
    shift1 = b1_ref[...]

    # Zero ONLY the x-padding column blocks read by the dx=+-1 taps (columns
    # PAD_L-1 and PAD_L+W); every interior/halo-row location is overwritten
    # unconditionally below, so no full-scratch fill is needed.
    zpad = jnp.zeros((TH + 2, PAD_L, Cmid), jnp.float32)
    midp_ref[:, 0:PAD_L, :] = zpad
    midp_ref[:, PAD_L + W:PAD_L + W + PAD_R, :] = zpad

    # --- CBL_1 (1x1 conv + BN + LeakyReLU) into the padded VMEM scratch ---
    x_strip = x_ref[0].astype(jnp.bfloat16)                             # (TH, W, Cin)
    mid = jax.lax.dot_general(x_strip, w1,
                              dimension_numbers=(((2,), (0,)), ((), ())),
                              preferred_element_type=jnp.float32)       # (TH, W, Cmid)
    mid = _leaky(mid * scale1 + shift1)
    midp_ref[1:TH + 1, PAD_L:PAD_L + W, :] = mid

    x_top = xt_ref[0, 0].astype(jnp.bfloat16)                           # (W, Cin)
    top = _leaky(jnp.dot(x_top, w1, preferred_element_type=jnp.float32)
                 * scale1 + shift1) * m_top
    midp_ref[0, PAD_L:PAD_L + W, :] = top

    x_bot = xb_ref[0, 0].astype(jnp.bfloat16)
    bot = _leaky(jnp.dot(x_bot, w1, preferred_element_type=jnp.float32)
                 * scale1 + shift1) * m_bot
    midp_ref[TH + 1, PAD_L:PAD_L + W, :] = bot

    # --- CBL_2: 3x3 conv (pad=1) as 9 shifted MXU matmuls, summed as a live
    # value (no accumulator VMEM read-modify-write). ---
    acc = None
    for t in range(9):
        dy, dx = divmod(t, 3)
        patch = midp_ref[dy:dy + TH, PAD_L - 1 + dx:PAD_L - 1 + dx + W, :]
        d = jax.lax.dot_general(patch.astype(jnp.bfloat16), w3_ref[t],
                                dimension_numbers=(((2,), (0,)), ((), ())),
                                preferred_element_type=jnp.float32)     # (TH, W, Cin)
        acc = d if acc is None else acc + d

    y = _leaky(acc * s2_ref[...] + b2_ref[...])
    o_ref[0] = y + x_ref[0]   # residual add in f32


# ---------------------------------------------------------------------------
# Chip-aware tiling helpers.
# ---------------------------------------------------------------------------
def _vmem_capacity_bytes():
    """Per-core VMEM capacity; conservative (v7x = 64 MiB/TC) fallback."""
    try:
        cap = getattr(pltpu.get_tpu_info(), "vmem_capacity_bytes", None)
        if cap:
            return int(cap)
    except Exception:
        pass
    return 64 * 1024 * 1024


def _strip_footprint_bytes(TH, W, Cin, Cmid):
    """VMEM working set for one grid step (pipeline double-buffers ins/outs)."""
    x_strip = TH * W * Cin * 4
    out_strip = TH * W * Cin * 4
    halos = 2 * W * Cin * 4
    weights = Cin * Cmid * 2 + 9 * Cmid * Cin * 2 + 2 * (Cmid + Cin) * 4
    midp = (TH + 2) * _scratch_w(W) * Cmid * 4
    return 2 * (x_strip + out_strip + halos + weights) + midp


def _pick_strip_h(H, N, W, Cin, Cmid, budget_bytes):
    """Largest divisor of H whose per-step working set fits the VMEM budget.

    When N == 1, also require >= 2 strips so the ("parallel","parallel") grid
    can be sharded across both TensorCores on v7x.
    """
    divisors = [d for d in range(H, 0, -1) if H % d == 0]
    cands = divisors
    if N == 1:
        two_step = [d for d in divisors if H // d >= 2]
        cands = two_step or divisors
    for d in cands:
        if _strip_footprint_bytes(d, W, Cin, Cmid) <= budget_bytes:
            return d
    return cands[-1]


def residual_block_pallas(x_nchw, params, strip_h=None):
    """x_nchw: (N, Cin, H, W) float32 -> (N, Cin, H, W) float32."""
    N, Cin, H, W = x_nchw.shape
    Cmid = params["w1"].shape[1]

    vmem_cap = _vmem_capacity_bytes()
    # ~40% of per-core VMEM as per-step working-set budget leaves headroom for
    # double-buffering and compiler-internal scratch on all of v5e/v6e/v7x.
    budget = int(0.4 * vmem_cap)

    TH = _pick_strip_h(H, N, W, Cin, Cmid, budget) if strip_h is None else strip_h
    assert H % TH == 0, f"strip height {TH} must divide H={H}"
    n_strips = H // TH

    footprint = _strip_footprint_bytes(TH, W, Cin, Cmid)
    vmem_limit = min(max(2 * footprint, 32 * 1024 * 1024), int(0.8 * vmem_cap))
    vmem_limit = max(vmem_limit, footprint + (1 << 20))

    # NCHW -> NHWC (channels on the lane axis).
    x = jnp.transpose(x_nchw, (0, 2, 3, 1)).astype(jnp.float32)

    w1 = params["w1"].astype(jnp.bfloat16)
    w3 = params["w3"].astype(jnp.bfloat16)

    kernel = functools.partial(_fused_residual_kernel,
                               TH=TH, W=W, Cin=Cin, Cmid=Cmid)

    out_nhwc = pl.pallas_call(
        kernel,
        out_shape=jax.ShapeDtypeStruct((N, H, W, Cin), jnp.float32),
        grid_spec=pltpu.PrefetchScalarGridSpec(
            num_scalar_prefetch=0,
            grid=(N, n_strips),
            in_specs=[
                # strip of x (matmul input + residual)
                pl.BlockSpec((1, TH, W, Cin), lambda n, s: (n, s, 0, 0)),
                # one halo row above / below the strip (clamped at the borders)
                pl.BlockSpec((1, 1, W, Cin),
                             lambda n, s: (n, jnp.maximum(s * TH - 1, 0), 0, 0)),
                pl.BlockSpec((1, 1, W, Cin),
                             lambda n, s: (n, jnp.minimum((s + 1) * TH, H - 1), 0, 0)),
                # weights / folded BN params: constant block index -> loaded once
                pl.BlockSpec((Cin, Cmid), lambda n, s: (0, 0)),
                pl.BlockSpec((9, Cmid, Cin), lambda n, s: (0, 0, 0)),
                pl.BlockSpec((1, Cmid), lambda n, s: (0, 0)),
                pl.BlockSpec((1, Cmid), lambda n, s: (0, 0)),
                pl.BlockSpec((1, Cin), lambda n, s: (0, 0)),
                pl.BlockSpec((1, Cin), lambda n, s: (0, 0)),
            ],
            out_specs=pl.BlockSpec((1, TH, W, Cin), lambda n, s: (n, s, 0, 0)),
            scratch_shapes=[
                pltpu.VMEM((TH + 2, _scratch_w(W), Cmid), jnp.float32),
            ],
        ),
        compiler_params=pltpu.CompilerParams(
            dimension_semantics=("parallel", "parallel"),
            vmem_limit_bytes=int(vmem_limit),
        ),
    )(x, x, x, w1, w3,
      params["scale1"], params["shift1"], params["scale2"], params["shift2"])

    return jnp.transpose(out_nhwc, (0, 3, 1, 2))  # back to NCHW


# ---------------------------------------------------------------------------
# Pure-JAX reference (unfused BN) for verification.
# ---------------------------------------------------------------------------
def _cbl_ref(x_nhwc, w_hwio, gamma, beta, mean, var, pad):
    y = jax.lax.conv_general_dilated(
        x_nhwc, w_hwio, window_strides=(1, 1),
        padding=[(pad, pad), (pad, pad)],
        dimension_numbers=("NHWC", "HWIO", "NHWC"))
    y = (y - mean) / jnp.sqrt(var + BN_EPS) * gamma + beta
    return jnp.where(y > 0, y, NEG_SLOPE * y)


def residual_block_ref(x_nchw, raw):
    x = jnp.transpose(x_nchw, (0, 2, 3, 1))
    m = _cbl_ref(x, raw["w1"].reshape(1, 1, *raw["w1"].shape),
                 raw["gamma1"], raw["beta1"], raw["mean1"], raw["var1"], pad=0)
    y = _cbl_ref(m, raw["w3_hwio"],
                 raw["gamma2"], raw["beta2"], raw["mean2"], raw["var2"], pad=1)
    return jnp.transpose(x + y, (0, 3, 1, 2))


def _fold_bn(gamma, beta, mean, var):
    scale = gamma / jnp.sqrt(var + BN_EPS)
    shift = beta - mean * scale
    return scale.reshape(1, -1), shift.reshape(1, -1)


if __name__ == "__main__":
    # Shapes consistent with ResidualBlock(in_channels=64, out_channels=32).
    N, Cin, Cmid, H, W = 2, 64, 32, 16, 16

    key = jax.random.PRNGKey(0)
    ks = jax.random.split(key, 12)

    # Deterministic synthetic parameters (no checkpoint loading).
    w1 = jax.random.normal(ks[0], (Cin, Cmid), jnp.float32) * 0.05
    w3_hwio = jax.random.normal(ks[1], (3, 3, Cmid, Cin), jnp.float32) * 0.05
    gamma1 = jax.random.uniform(ks[2], (Cmid,), jnp.float32, 0.5, 1.5)
    beta1 = jax.random.normal(ks[3], (Cmid,), jnp.float32) * 0.1
    mean1 = jax.random.normal(ks[4], (Cmid,), jnp.float32) * 0.1
    var1 = jax.random.uniform(ks[5], (Cmid,), jnp.float32, 0.5, 1.5)
    gamma2 = jax.random.uniform(ks[6], (Cin,), jnp.float32, 0.5, 1.5)
    beta2 = jax.random.normal(ks[7], (Cin,), jnp.float32) * 0.1
    mean2 = jax.random.normal(ks[8], (Cin,), jnp.float32) * 0.1
    var2 = jax.random.uniform(ks[9], (Cin,), jnp.float32, 0.5, 1.5)

    x = jax.random.normal(ks[10], (N, Cin, H, W), jnp.float32)

    scale1, shift1 = _fold_bn(gamma1, beta1, mean1, var1)
    scale2, shift2 = _fold_bn(gamma2, beta2, mean2, var2)
    params = {
        "w1": w1,
        "w3": w3_hwio.reshape(9, Cmid, Cin),  # taps in (ky*3 + kx) order
        "scale1": scale1, "shift1": shift1,
        "scale2": scale2, "shift2": shift2,
    }
    raw = {
        "w1": w1, "w3_hwio": w3_hwio,
        "gamma1": gamma1, "beta1": beta1, "mean1": mean1, "var1": var1,
        "gamma2": gamma2, "beta2": beta2, "mean2": mean2, "var2": var2,
    }

    ref = jax.block_until_ready(residual_block_ref(x, raw))

    # Multi-strip path (2 strips of 8 rows -> exercises halo exchange + masks).
    out_strips = jax.block_until_ready(residual_block_pallas(x, params, strip_h=8))
    # Auto-tiled path (chip-aware strip height; whole image at this size).
    out_whole = jax.block_until_ready(residual_block_pallas(x, params))

    assert out_strips.shape == (N, Cin, H, W), out_strips.shape
    # bf16 MXU inputs -> slightly looser tolerance than pure f32.
    assert jnp.allclose(out_strips, ref, atol=2e-2, rtol=2e-2), float(
        jnp.max(jnp.abs(out_strips - ref)))
    assert jnp.allclose(out_whole, ref, atol=2e-2, rtol=2e-2), float(
        jnp.max(jnp.abs(out_whole - ref)))
    print("KERNEL_OK")
</pallas_src>

<mosaic_0001>
module attributes {stable_mosaic.version = 11 : i64} {
  func.func @_fused_residual_kernel(%arg0: i32, %arg1: i32, %arg2: memref<1x8x16x64xf32, #tpu.memory_space<vmem>>, %arg3: memref<1x1x16x64xf32, #tpu.memory_space<vmem>>, %arg4: memref<1x1x16x64xf32, #tpu.memory_space<vmem>>, %arg5: memref<64x32xbf16, #tpu.memory_space<vmem>>, %arg6: memref<9x32x64xbf16, #tpu.memory_space<vmem>>, %arg7: memref<1x32xf32, #tpu.memory_space<vmem>>, %arg8: memref<1x32xf32, #tpu.memory_space<vmem>>, %arg9: memref<1x64xf32, #tpu.memory_space<vmem>>, %arg10: memref<1x64xf32, #tpu.memory_space<vmem>>, %arg11: memref<1x8x16x64xf32, #tpu.memory_space<vmem>>, %arg12: memref<10x32x32xf32, #tpu.memory_space<vmem>>) attributes {dimension_semantics = [#tpu.dimension_semantics<parallel>, #tpu.dimension_semantics<parallel>], iteration_bounds = array<i64: 2, 2>, scalar_prefetch = 0 : i64, scratch_operands = 1 : i64, tpu.core_type = #tpu.core_type<tc>, window_params = [{transform_indices = @transform_0, window_bounds = array<i64: 1, 8, 16, 64>}, {transform_indices = @transform_1, window_bounds = array<i64: 1, 1, 16, 64>}, {transform_indices = @transform_2, window_bounds = array<i64: 1, 1, 16, 64>}, {pipeline_mode = #tpu.pipeline_mode<synchronous>, transform_indices = @transform_3, window_bounds = array<i64: 64, 32>}, {pipeline_mode = #tpu.pipeline_mode<synchronous>, transform_indices = @transform_4, window_bounds = array<i64: 9, 32, 64>}, {pipeline_mode = #tpu.pipeline_mode<synchronous>, transform_indices = @transform_5, window_bounds = array<i64: 1, 32>}, {pipeline_mode = #tpu.pipeline_mode<synchronous>, transform_indices = @transform_6, window_bounds = array<i64: 1, 32>}, {pipeline_mode = #tpu.pipeline_mode<synchronous>, transform_indices = @transform_7, window_bounds = array<i64: 1, 64>}, {pipeline_mode = #tpu.pipeline_mode<synchronous>, transform_indices = @transform_8, window_bounds = array<i64: 1, 64>}, {transform_indices = @transform_9, window_bounds = array<i64: 1, 8, 16, 64>}]} {
    %c0_i32 = arith.constant 0 : i32
    %0 = arith.cmpi sgt, %arg1, %c0_i32 : i32
    %1 = arith.extui %0 : i1 to i32
    %2 = arith.sitofp %1 : i32 to f32
    %c1_i32 = arith.constant 1 : i32
    %3 = arith.cmpi slt, %arg1, %c1_i32 : i32
    %4 = arith.extui %3 : i1 to i32
    %5 = arith.sitofp %4 : i32 to f32
    %c0 = arith.constant 0 : index
    %c0_0 = arith.constant 0 : index
    %6 = vector.load %arg5[%c0, %c0_0] : memref<64x32xbf16, #tpu.memory_space<vmem>>, vector<64x32xbf16>
    %c0_1 = arith.constant 0 : index
    %c0_2 = arith.constant 0 : index
    %7 = vector.load %arg7[%c0_1, %c0_2] : memref<1x32xf32, #tpu.memory_space<vmem>>, vector<1x32xf32>
    %c0_3 = arith.constant 0 : index
    %c0_4 = arith.constant 0 : index
    %8 = vector.load %arg8[%c0_3, %c0_4] : memref<1x32xf32, #tpu.memory_space<vmem>>, vector<1x32xf32>
    %cst = arith.constant 0.000000e+00 : f32
    %9 = vector.broadcast %cst : f32 to vector<10x8x32xf32>
    %c0_5 = arith.constant 0 : index
    %c0_6 = arith.constant 0 : index
    %c0_7 = arith.constant 0 : index
    %10 = vector.load %arg12[%c0_5, %c0_6, %c0_7] : memref<10x32x32xf32, #tpu.memory_space<vmem>>, vector<10x8x32xf32>
    tpu.vector_store %arg12[%c0_5, %c0_6, %c0_7], %9 {strides = array<i32>} : memref<10x32x32xf32, #tpu.memory_space<vmem>>, vector<10x8x32xf32>,
    %c0_8 = arith.constant 0 : index
    %c24 = arith.constant 24 : index
    %c0_9 = arith.constant 0 : index
    %11 = vector.load %arg12[%c0_8, %c24, %c0_9] : memref<10x32x32xf32, #tpu.memory_space<vmem>>, vector<10x8x32xf32>
    tpu.vector_store %arg12[%c0_8, %c24, %c0_9], %9 {strides = array<i32>} : memref<10x32x32xf32, #tpu.memory_space<vmem>>, vector<10x8x32xf32>,
    %c0_10 = arith.constant 0 : index
    %c0_11 = arith.constant 0 : index
    %c0_12 = arith.constant 0 : index
    %c0_13 = arith.constant 0 : index
    %12 = vector.load %arg2[%c0_10, %c0_11, %c0_12, %c0_13] : memref<1x8x16x64xf32, #tpu.memory_space<vmem>>, vector<1x8x16x64xf32>
    %13 = vector.shape_cast %12 : vector<1x8x16x64xf32> to vector<8x16x64xf32>
    %14 = arith.truncf %13 : vector<8x16x64xf32> to vector<8x16x64xbf16>
    %cst_14 = arith.constant dense<0.000000e+00> : vector<8x16x32xf32>
    %15 = tpu.matmul %14, %6, %cst_14 {dimension_numbers = #tpu.dot_dimension_numbers<[2], [0], [0, 1], [1], [0, 0, 0, 1, 1, 1], [], []>} : vector<8x16x64xbf16>, vector<64x32xbf16>, vector<8x16x32xf32> -> vector<8x16x32xf32>
    %16 = vector.shape_cast %7 : vector<1x32xf32> to vector<1x1x32xf32>
    %17 = vector.broadcast %16 : vector<1x1x32xf32> to vector<8x16x32xf32>
    %18 = arith.mulf %15, %17 : vector<8x16x32xf32>
    %19 = vector.shape_cast %8 : vector<1x32xf32> to vector<1x1x32xf32>
    %20 = vector.broadcast %19 : vector<1x1x32xf32> to vector<8x16x32xf32>
    %21 = arith.addf %18, %20 : vector<8x16x32xf32>
    %cst_15 = arith.constant 0.000000e+00 : f32
    %22 = vector.broadcast %cst_15 : f32 to vector<8x16x32xf32>
    %23 = arith.cmpf ogt, %21, %22 : vector<8x16x32xf32>
    %cst_16 = arith.constant 1.000000e-01 : f32
    %24 = vector.broadcast %cst_16 : f32 to vector<8x16x32xf32>
    %25 = arith.mulf %24, %21 : vector<8x16x32xf32>
    %26 = arith.select %23, %21, %25 : vector<8x16x32xi1>, vector<8x16x32xf32>
    %c1 = arith.constant 1 : index
    %c8 = arith.constant 8 : index
    %c0_17 = arith.constant 0 : index
    %27 = vector.load %arg12[%c1, %c8, %c0_17] : memref<10x32x32xf32, #tpu.memory_space<vmem>>, vector<8x16x32xf32>
    tpu.vector_store %arg12[%c1, %c8, %c0_17], %26 {strides = array<i32>} : memref<10x32x32xf32, #tpu.memory_space<vmem>>, vector<8x16x32xf32>,
    %c0_18 = arith.constant 0 : index
    %c0_19 = arith.constant 0 : index
    %c0_20 = arith.constant 0 : index
    %c0_21 = arith.constant 0 : index
    %28 = vector.load %arg3[%c0_18, %c0_19, %c0_20, %c0_21] : memref<1x1x16x64xf32, #tpu.memory_space<vmem>>, vector<1x1x16x64xf32>
    %29 = vector.shape_cast %28 : vector<1x1x16x64xf32> to vector<16x64xf32>
    %30 = arith.truncf %29 : vector<16x64xf32> to vector<16x64xbf16>
    %cst_22 = arith.constant dense<0.000000e+00> : vector<16x32xf32>
    %31 = tpu.matmul %30, %6, %cst_22 {dimension_numbers = #tpu.dot_dimension_numbers<[1], [0], [0], [1], [0, 0, 1, 1], [], []>} : vector<16x64xbf16>, vector<64x32xbf16>, vector<16x32xf32> -> vector<16x32xf32>
    %32 = vector.broadcast %7 : vector<1x32xf32> to vector<16x32xf32>
    %33 = arith.mulf %31, %32 : vector<16x32xf32>
    %34 = vector.broadcast %8 : vector<1x32xf32> to vector<16x32xf32>
    %35 = arith.addf %33, %34 : vector<16x32xf32>
    %cst_23 = arith.constant 0.000000e+00 : f32
    %36 = vector.broadcast %cst_23 : f32 to vector<16x32xf32>
    %37 = arith.cmpf ogt, %35, %36 : vector<16x32xf32>
    %cst_24 = arith.constant 1.000000e-01 : f32
    %38 = vector.broadcast %cst_24 : f32 to vector<16x32xf32>
    %39 = arith.mulf %38, %35 : vector<16x32xf32>
    %40 = arith.select %37, %35, %39 : vector<16x32xi1>, vector<16x32xf32>
    %41 = vector.broadcast %2 : f32 to vector<16x32xf32>
    %42 = arith.mulf %40, %41 : vector<16x32xf32>
    %c0_25 = arith.constant 0 : index
    %c8_26 = arith.constant 8 : index
    %c0_27 = arith.constant 0 : index
    %43 = vector.load %arg12[%c0_25, %c8_26, %c0_27] : memref<10x32x32xf32, #tpu.memory_space<vmem>>, vector<1x16x32xf32>
    %44 = vector.shape_cast %43 : vector<1x16x32xf32> to vector<16x32xf32>
    %45 = vector.shape_cast %42 : vector<16x32xf32> to vector<1x16x32xf32>
    tpu.vector_store %arg12[%c0_25, %c8_26, %c0_27], %45 {strides = array<i32>} : memref<10x32x32xf32, #tpu.memory_space<vmem>>, vector<1x16x32xf32>,
    %c0_28 = arith.constant 0 : index
    %c0_29 = arith.constant 0 : index
    %c0_30 = arith.constant 0 : index
    %c0_31 = arith.constant 0 : index
    %46 = vector.load %arg4[%c0_28, %c0_29, %c0_30, %c0_31] : memref<1x1x16x64xf32, #tpu.memory_space<vmem>>, vector<1x1x16x64xf32>
    %47 = vector.shape_cast %46 : vector<1x1x16x64xf32> to vector<16x64xf32>
    %48 = arith.truncf %47 : vector<16x64xf32> to vector<16x64xbf16>
    %cst_32 = arith.constant dense<0.000000e+00> : vector<16x32xf32>
    %49 = tpu.matmul %48, %6, %cst_32 {dimension_numbers = #tpu.dot_dimension_numbers<[1], [0], [0], [1], [0, 0, 1, 1], [], []>} : vector<16x64xbf16>, vector<64x32xbf16>, vector<16x32xf32> -> vector<16x32xf32>
    %50 = vector.broadcast %7 : vector<1x32xf32> to vector<16x32xf32>
    %51 = arith.mulf %49, %50 : vector<16x32xf32>
    %52 = vector.broadcast %8 : vector<1x32xf32> to vector<16x32xf32>
    %53 = arith.addf %51, %52 : vector<16x32xf32>
    %cst_33 = arith.constant 0.000000e+00 : f32
    %54 = vector.broadcast %cst_33 : f32 to vector<16x32xf32>
    %55 = arith.cmpf ogt, %53, %54 : vector<16x32xf32>
    %cst_34 = arith.constant 1.000000e-01 : f32
    %56 = vector.broadcast %cst_34 : f32 to vector<16x32xf32>
    %57 = arith.mulf %56, %53 : vector<16x32xf32>
    %58 = arith.select %55, %53, %57 : vector<16x32xi1>, vector<16x32xf32>
    %59 = vector.broadcast %5 : f32 to vector<16x32xf32>
    %60 = arith.mulf %58, %59 : vector<16x32xf32>
    %c9 = arith.constant 9 : index
    %c8_35 = arith.constant 8 : index
    %c0_36 = arith.constant 0 : index
    %61 = vector.load %arg12[%c9, %c8_35, %c0_36] : memref<10x32x32xf32, #tpu.memory_space<vmem>>, vector<1x16x32xf32>
    %62 = vector.shape_cast %61 : vector<1x16x32xf32> to vector<16x32xf32>
    %63 = vector.shape_cast %60 : vector<16x32xf32> to vector<1x16x32xf32>
    tpu.vector_store %arg12[%c9, %c8_35, %c0_36], %63 {strides = array<i32>} : memref<10x32x32xf32, #tpu.memory_space<vmem>>, vector<1x16x32xf32>,
    %c0_37 = arith.constant 0 : index
    %c7 = arith.constant 7 : index
    %c0_38 = arith.constant 0 : index
    %64 = vector.load %arg12[%c0_37, %c7, %c0_38] : memref<10x32x32xf32, #tpu.memory_space<vmem>>, vector<8x16x32xf32>
    %65 = arith.truncf %64 : vector<8x16x32xf32> to vector<8x16x32xbf16>
    %c0_39 = arith.constant 0 : index
    %c0_40 = arith.constant 0 : index
    %c0_41 = arith.constant 0 : index
    %66 = vector.load %arg6[%c0_39, %c0_40, %c0_41] : memref<9x32x64xbf16, #tpu.memory_space<vmem>>, vector<1x32x64xbf16>
    %67 = vector.shape_cast %66 : vector<1x32x64xbf16> to vector<32x64xbf16>
    %cst_42 = arith.constant dense<0.000000e+00> : vector<8x16x64xf32>
    %68 = tpu.matmul %65, %67, %cst_42 {dimension_numbers = #tpu.dot_dimension_numbers<[2], [0], [0, 1], [1], [0, 0, 0, 1, 1, 1], [], []>} : vector<8x16x32xbf16>, vector<32x64xbf16>, vector<8x16x64xf32> -> vector<8x16x64xf32>
    %c0_43 = arith.constant 0 : index
    %c8_44 = arith.constant 8 : index
    %c0_45 = arith.constant 0 : index
    %69 = vector.load %arg12[%c0_43, %c8_44, %c0_45] : memref<10x32x32xf32, #tpu.memory_space<vmem>>, vector<8x16x32xf32>
    %70 = arith.truncf %69 : vector<8x16x32xf32> to vector<8x16x32xbf16>
    %c1_46 = arith.constant 1 : index
    %c0_47 = arith.constant 0 : index
    %c0_48 = arith.constant 0 : index
    %71 = vector.load %arg6[%c1_46, %c0_47, %c0_48] : memref<9x32x64xbf16, #tpu.memory_space<vmem>>, vector<1x32x64xbf16>
    %72 = vector.shape_cast %71 : vector<1x32x64xbf16> to vector<32x64xbf16>
    %cst_49 = arith.constant dense<0.000000e+00> : vector<8x16x64xf32>
    %73 = tpu.matmul %70, %72, %cst_49 {dimension_numbers = #tpu.dot_dimension_numbers<[2], [0], [0, 1], [1], [0, 0, 0, 1, 1, 1], [], []>} : vector<8x16x32xbf16>, vector<32x64xbf16>, vector<8x16x64xf32> -> vector<8x16x64xf32>
    %74 = arith.addf %68, %73 : vector<8x16x64xf32>
    %c0_50 = arith.constant 0 : index
    %c9_51 = arith.constant 9 : index
    %c0_52 = arith.constant 0 : index
    %75 = vector.load %arg12[%c0_50, %c9_51, %c0_52] : memref<10x32x32xf32, #tpu.memory_space<vmem>>, vector<8x16x32xf32>
    %76 = arith.truncf %75 : vector<8x16x32xf32> to vector<8x16x32xbf16>
    %c2 = arith.constant 2 : index
    %c0_53 = arith.constant 0 : index
    %c0_54 = arith.constant 0 : index
    %77 = vector.load %arg6[%c2, %c0_53, %c0_54] : memref<9x32x64xbf16, #tpu.memory_space<vmem>>, vector<1x32x64xbf16>
    %78 = vector.shape_cast %77 : vector<1x32x64xbf16> to vector<32x64xbf16>
    %cst_55 = arith.constant dense<0.000000e+00> : vector<8x16x64xf32>
    %79 = tpu.matmul %76, %78, %cst_55 {dimension_numbers = #tpu.dot_dimension_numbers<[2], [0], [0, 1], [1], [0, 0, 0, 1, 1, 1], [], []>} : vector<8x16x32xbf16>, vector<32x64xbf16>, vector<8x16x64xf32> -> vector<8x16x64xf32>
    %80 = arith.addf %74, %79 : vector<8x16x64xf32>
    %c1_56 = arith.constant 1 : index
    %c7_57 = arith.constant 7 : index
    %c0_58 = arith.constant 0 : index
    %81 = vector.load %arg12[%c1_56, %c7_57, %c0_58] : memref<10x32x32xf32, #tpu.memory_space<vmem>>, vector<8x16x32xf32>
    %82 = arith.truncf %81 : vector<8x16x32xf32> to vector<8x16x32xbf16>
    %c3 = arith.constant 3 : index
    %c0_59 = arith.constant 0 : index
    %c0_60 = arith.constant 0 : index
    %83 = vector.load %arg6[%c3, %c0_59, %c0_60] : memref<9x32x64xbf16, #tpu.memory_space<vmem>>, vector<1x32x64xbf16>
    %84 = vector.shape_cast %83 : vector<1x32x64xbf16> to vector<32x64xbf16>
    %cst_61 = arith.constant dense<0.000000e+00> : vector<8x16x64xf32>
    %85 = tpu.matmul %82, %84, %cst_61 {dimension_numbers = #tpu.dot_dimension_numbers<[2], [0], [0, 1], [1], [0, 0, 0, 1, 1, 1], [], []>} : vector<8x16x32xbf16>, vector<32x64xbf16>, vector<8x16x64xf32> -> vector<8x16x64xf32>
    %86 = arith.addf %80, %85 : vector<8x16x64xf32>
    %c1_62 = arith.constant 1 : index
    %c8_63 = arith.constant 8 : index
    %c0_64 = arith.constant 0 : index
    %87 = vector.load %arg12[%c1_62, %c8_63, %c0_64] : memref<10x32x32xf32, #tpu.memory_space<vmem>>, vector<8x16x32xf32>
    %88 = arith.truncf %87 : vector<8x16x32xf32> to vector<8x16x32xbf16>
    %c4 = arith.constant 4 : index
    %c0_65 = arith.constant 0 : index
    %c0_66 = arith.constant 0 : index
    %89 = vector.load %arg6[%c4, %c0_65, %c0_66] : memref<9x32x64xbf16, #tpu.memory_space<vmem>>, vector<1x32x64xbf16>
    %90 = vector.shape_cast %89 : vector<1x32x64xbf16> to vector<32x64xbf16>
    %cst_67 = arith.constant dense<0.000000e+00> : vector<8x16x64xf32>
    %91 = tpu.matmul %88, %90, %cst_67 {dimension_numbers = #tpu.dot_dimension_numbers<[2], [0], [0, 1], [1], [0, 0, 0, 1, 1, 1], [], []>} : vector<8x16x32xbf16>, vector<32x64xbf16>, vector<8x16x64xf32> -> vector<8x16x64xf32>
    %92 = arith.addf %86, %91 : vector<8x16x64xf32>
    %c1_68 = arith.constant 1 : index
    %c9_69 = arith.constant 9 : index
    %c0_70 = arith.constant 0 : index
    %93 = vector.load %arg12[%c1_68, %c9_69, %c0_70] : memref<10x32x32xf32, #tpu.memory_space<vmem>>, vector<8x16x32xf32>
    %94 = arith.truncf %93 : vector<8x16x32xf32> to vector<8x16x32xbf16>
    %c5 = arith.constant 5 : index
    %c0_71 = arith.constant 0 : index
    %c0_72 = arith.constant 0 : index
    %95 = vector.load %arg6[%c5, %c0_71, %c0_72] : memref<9x32x64xbf16, #tpu.memory_space<vmem>>, vector<1x32x64xbf16>
    %96 = vector.shape_cast %95 : vector<1x32x64xbf16> to vector<32x64xbf16>
    %cst_73 = arith.constant dense<0.000000e+00> : vector<8x16x64xf32>
    %97 = tpu.matmul %94, %96, %cst_73 {dimension_numbers = #tpu.dot_dimension_numbers<[2], [0], [0, 1], [1], [0, 0, 0, 1, 1, 1], [], []>} : vector<8x16x32xbf16>, vector<32x64xbf16>, vector<8x16x64xf32> -> vector<8x16x64xf32>
    %98 = arith.addf %92, %97 : vector<8x16x64xf32>
    %c2_74 = arith.constant 2 : index
    %c7_75 = arith.constant 7 : index
    %c0_76 = arith.constant 0 : index
    %99 = vector.load %arg12[%c2_74, %c7_75, %c0_76] : memref<10x32x32xf32, #tpu.memory_space<vmem>>, vector<8x16x32xf32>
    %100 = arith.truncf %99 : vector<8x16x32xf32> to vector<8x16x32xbf16>
    %c6 = arith.constant 6 : index
    %c0_77 = arith.constant 0 : index
    %c0_78 = arith.constant 0 : index
    %101 = vector.load %arg6[%c6, %c0_77, %c0_78] : memref<9x32x64xbf16, #tpu.memory_space<vmem>>, vector<1x32x64xbf16>
    %102 = vector.shape_cast %101 : vector<1x32x64xbf16> to vector<32x64xbf16>
    %cst_79 = arith.constant dense<0.000000e+00> : vector<8x16x64xf32>
    %103 = tpu.matmul %100, %102, %cst_79 {dimension_numbers = #tpu.dot_dimension_numbers<[2], [0], [0, 1], [1], [0, 0, 0, 1, 1, 1], [], []>} : vector<8x16x32xbf16>, vector<32x64xbf16>, vector<8x16x64xf32> -> vector<8x16x64xf32>
    %104 = arith.addf %98, %103 : vector<8x16x64xf32>
    %c2_80 = arith.constant 2 : index
    %c8_81 = arith.constant 8 : index
    %c0_82 = arith.constant 0 : index
    %105 = vector.load %arg12[%c2_80, %c8_81, %c0_82] : memref<10x32x32xf32, #tpu.memory_space<vmem>>, vector<8x16x32xf32>
    %106 = arith.truncf %105 : vector<8x16x32xf32> to vector<8x16x32xbf16>
    %c7_83 = arith.constant 7 : index
    %c0_84 = arith.constant 0 : index
    %c0_85 = arith.constant 0 : index
    %107 = vector.load %arg6[%c7_83, %c0_84, %c0_85] : memref<9x32x64xbf16, #tpu.memory_space<vmem>>, vector<1x32x64xbf16>
    %108 = vector.shape_cast %107 : vector<1x32x64xbf16> to vector<32x64xbf16>
    %cst_86 = arith.constant dense<0.000000e+00> : vector<8x16x64xf32>
    %109 = tpu.matmul %106, %108, %cst_86 {dimension_numbers = #tpu.dot_dimension_numbers<[2], [0], [0, 1], [1], [0, 0, 0, 1, 1, 1], [], []>} : vector<8x16x32xbf16>, vector<32x64xbf16>, vector<8x16x64xf32> -> vector<8x16x64xf32>
    %110 = arith.addf %104, %109 : vector<8x16x64xf32>
    %c2_87 = arith.constant 2 : index
    %c9_88 = arith.constant 9 : index
    %c0_89 = arith.constant 0 : index
    %111 = vector.load %arg12[%c2_87, %c9_88, %c0_89] : memref<10x32x32xf32, #tpu.memory_space<vmem>>, vector<8x16x32xf32>
    %112 = arith.truncf %111 : vector<8x16x32xf32> to vector<8x16x32xbf16>
    %c8_90 = arith.constant 8 : index
    %c0_91 = arith.constant 0 : index
    %c0_92 = arith.constant 0 : index
    %113 = vector.load %arg6[%c8_90, %c0_91, %c0_92] : memref<9x32x64xbf16, #tpu.memory_space<vmem>>, vector<1x32x64xbf16>
    %114 = vector.shape_cast %113 : vector<1x32x64xbf16> to vector<32x64xbf16>
    %cst_93 = arith.constant dense<0.000000e+00> : vector<8x16x64xf32>
    %115 = tpu.matmul %112, %114, %cst_93 {dimension_numbers = #tpu.dot_dimension_numbers<[2], [0], [0, 1], [1], [0, 0, 0, 1, 1, 1], [], []>} : vector<8x16x32xbf16>, vector<32x64xbf16>, vector<8x16x64xf32> -> vector<8x16x64xf32>
    %116 = arith.addf %110, %115 : vector<8x16x64xf32>
    %c0_94 = arith.constant 0 : index
    %c0_95 = arith.constant 0 : index
    %117 = vector.load %arg9[%c0_94, %c0_95] : memref<1x64xf32, #tpu.memory_space<vmem>>, vector<1x64xf32>
    %118 = vector.shape_cast %117 : vector<1x64xf32> to vector<1x1x64xf32>
    %119 = vector.broadcast %118 : vector<1x1x64xf32> to vector<8x16x64xf32>
    %120 = arith.mulf %116, %119 : vector<8x16x64xf32>
    %c0_96 = arith.constant 0 : index
    %c0_97 = arith.constant 0 : index
    %121 = vector.load %arg10[%c0_96, %c0_97] : memref<1x64xf32, #tpu.memory_space<vmem>>, vector<1x64xf32>
    %122 = vector.shape_cast %121 : vector<1x64xf32> to vector<1x1x64xf32>
    %123 = vector.broadcast %122 : vector<1x1x64xf32> to vector<8x16x64xf32>
    %124 = arith.addf %120, %123 : vector<8x16x64xf32>
    %cst_98 = arith.constant 0.000000e+00 : f32
    %125 = vector.broadcast %cst_98 : f32 to vector<8x16x64xf32>
    %126 = arith.cmpf ogt, %124, %125 : vector<8x16x64xf32>
    %cst_99 = arith.constant 1.000000e-01 : f32
    %127 = vector.broadcast %cst_99 : f32 to vector<8x16x64xf32>
    %128 = arith.mulf %127, %124 : vector<8x16x64xf32>
    %129 = arith.select %126, %124, %128 : vector<8x16x64xi1>, vector<8x16x64xf32>
    %c0_100 = arith.constant 0 : index
    %c0_101 = arith.constant 0 : index
    %c0_102 = arith.constant 0 : index
    %c0_103 = arith.constant 0 : index
    %130 = vector.load %arg2[%c0_100, %c0_101, %c0_102, %c0_103] : memref<1x8x16x64xf32, #tpu.memory_space<vmem>>, vector<1x8x16x64xf32>
    %131 = vector.shape_cast %130 : vector<1x8x16x64xf32> to vector<8x16x64xf32>
    %132 = arith.addf %129, %131 : vector<8x16x64xf32>
    %c0_104 = arith.constant 0 : index
    %c0_105 = arith.constant 0 : index
    %c0_106 = arith.constant 0 : index
    %c0_107 = arith.constant 0 : index
    %133 = vector.load %arg11[%c0_104, %c0_105, %c0_106, %c0_107] : memref<1x8x16x64xf32, #tpu.memory_space<vmem>>, vector<1x8x16x64xf32>
    %134 = vector.shape_cast %133 : vector<1x8x16x64xf32> to vector<8x16x64xf32>
    %135 = vector.shape_cast %132 : vector<8x16x64xf32> to vector<1x8x16x64xf32>
    tpu.vector_store %arg11[%c0_104, %c0_105, %c0_106, %c0_107], %135 {strides = array<i32>} : memref<1x8x16x64xf32, #tpu.memory_space<vmem>>, vector<1x8x16x64xf32>,
    return
  }
  func.func @transform_0(%arg0: i32, %arg1: i32) -> (i32, i32, i32, i32) {
    %c0_i32 = arith.constant 0 : i32
    %c0_i32_0 = arith.constant 0 : i32
    %c0_i32_1 = arith.constant 0 : i32
    return %arg0, %arg1, %c0_i32, %c0_i32_0 : i32, i32, i32, i32
  }
  func.func @transform_1(%arg0: i32, %arg1: i32) -> (i32, i32, i32, i32) {
    %c8_i32 = arith.constant 8 : i32
    %0 = arith.muli %arg1, %c8_i32 : i32
    %c1_i32 = arith.constant 1 : i32
    %1 = arith.subi %0, %c1_i32 : i32
    %c0_i32 = arith.constant 0 : i32
    %2 = arith.maxsi %1, %c0_i32 : i32
    %c0_i32_0 = arith.constant 0 : i32
    %c0_i32_1 = arith.constant 0 : i32
    %c0_i32_2 = arith.constant 0 : i32
    return %arg0, %2, %c0_i32_0, %c0_i32_1 : i32, i32, i32, i32
  }
  func.func @transform_2(%arg0: i32, %arg1: i32) -> (i32, i32, i32, i32) {
    %c1_i32 = arith.constant 1 : i32
    %0 = arith.addi %arg1, %c1_i32 : i32
    %c8_i32 = arith.constant 8 : i32
    %1 = arith.muli %0, %c8_i32 : i32
    %c15_i32 = arith.constant 15 : i32
    %2 = arith.minsi %1, %c15_i32 : i32
    %c0_i32 = arith.constant 0 : i32
    %c0_i32_0 = arith.constant 0 : i32
    %c0_i32_1 = arith.constant 0 : i32
    return %arg0, %2, %c0_i32, %c0_i32_0 : i32, i32, i32, i32
  }
  func.func @transform_3(%arg0: i32, %arg1: i32) -> (i32, i32) {
    %c0_i32 = arith.constant 0 : i32
    %c0_i32_0 = arith.constant 0 : i32
    %c0_i32_1 = arith.constant 0 : i32
    return %c0_i32, %c0_i32_0 : i32, i32
  }
  func.func @transform_4(%arg0: i32, %arg1: i32) -> (i32, i32, i32) {
    %c0_i32 = arith.constant 0 : i32
    %c0_i32_0 = arith.constant 0 : i32
    %c0_i32_1 = arith.constant 0 : i32
    %c0_i32_2 = arith.constant 0 : i32
    return %c0_i32, %c0_i32_0, %c0_i32_1 : i32, i32, i32
  }
  func.func @transform_5(%arg0: i32, %arg1: i32) -> (i32, i32) {
    %c0_i32 = arith.constant 0 : i32
    %c0_i32_0 = arith.constant 0 : i32
    %c0_i32_1 = arith.constant 0 : i32
    return %c0_i32, %c0_i32_0 : i32, i32
  }
  func.func @transform_6(%arg0: i32, %arg1: i32) -> (i32, i32) {
    %c0_i32 = arith.constant 0 : i32
    %c0_i32_0 = arith.constant 0 : i32
    %c0_i32_1 = arith.constant 0 : i32
    return %c0_i32, %c0_i32_0 : i32, i32
  }
  func.func @transform_7(%arg0: i32, %arg1: i32) -> (i32, i32) {
    %c0_i32 = arith.constant 0 : i32
    %c0_i32_0 = arith.constant 0 : i32
    %c0_i32_1 = arith.constant 0 : i32
    return %c0_i32, %c0_i32_0 : i32, i32
  }
  func.func @transform_8(%arg0: i32, %arg1: i32) -> (i32, i32) {
    %c0_i32 = arith.constant 0 : i32
    %c0_i32_0 = arith.constant 0 : i32
    %c0_i32_1 = arith.constant 0 : i32
    return %c0_i32, %c0_i32_0 : i32, i32
  }
  func.func @transform_9(%arg0: i32, %arg1: i32) -> (i32, i32, i32, i32) {
    %c0_i32 = arith.constant 0 : i32
    %c0_i32_0 = arith.constant 0 : i32
    %c0_i32_1 = arith.constant 0 : i32
    return %arg0, %arg1, %c0_i32, %c0_i32_0 : i32, i32, i32, i32
  }
}

</mosaic_0001>

<bundles_post_ra>
// kernel: tpu_custom_call.1
= control target key start
LH: loop header
LB: loop body
LE: loop exit
PB: predicated region body
PF: predicated region fallthrough
CT: control target
= control target key end

     0   :  { %s4898_s0 = inlined_call_operand.hbm [shape: f32[2,16,16,64], index: 0, kind: input, shape index: {}]   ;;  %s4899_s1 = inlined_call_operand.hbm [shape: f32[2,16,16,64], index: 1, kind: input, shape index: {}]   ;;  %s4900_s2 = inlined_call_operand.hbm [shape: f32[2,16,16,64], index: 2, kind: input, shape index: {}]   ;;  %s4901_s3 = inlined_call_operand.vmem [shape: bf16[64,32], index: 3, kind: input, shape index: {}]   ;;  %s4902_s4 = inlined_call_operand.hbm [shape: bf16[9,32,64], index: 4, kind: input, shape index: {}]   ;;  %s4903_s5 = inlined_call_operand.vmem [shape: f32[1,32], index: 5, kind: input, shape index: {}]   ;;  %s4904_s6 = inlined_call_operand.vmem [shape: f32[1,32], index: 6, kind: input, shape index: {}]   ;;  %s4905_s7 = inlined_call_operand.vmem [shape: f32[1,64], index: 7, kind: input, shape index: {}]   ;;  %s4906_s8 = inlined_call_operand.vmem [shape: f32[1,64], index: 8, kind: input, shape index: {}]   ;;  %s4907_s9 = inlined_call_operand.hbm [shape: f32[2,16,16,64], index: 9, kind: output, shape index: {}]  }
   0x1   :  { %4935 = sst [smem:[#allocation33_spill]] %s4898_s0 }
   0x2   :  { %4936 = sst [smem:[#allocation34_spill]] %s4899_s1 }
   0x3   :  { %4937 = sst [smem:[#allocation35_spill]] %s4900_s2 }
   0x4   :  { %4938 = sst [smem:[#allocation36_spill]] %s4901_s3 }
   0x5   :  { %4939 = sst [smem:[#allocation37_spill]] %s4902_s4 }
   0x6   :  { %4940 = sst [smem:[#allocation38_spill]] %s4903_s5 }
   0x7   :  { %4941 = sst [smem:[#allocation39_spill]] %s4904_s6 }
   0x8   :  { %4942 = sst [smem:[#allocation40_spill]] %s4905_s7 }
   0x9   :  { %4943 = sst [smem:[#allocation41_spill]] %s4906_s8 }
   0xa   :  { %4944 = sst [smem:[#allocation42_spill]] %s4907_s9 }
   0xb   :  { %14 = vsyncpa [#allocation4], 0 }
   0xc   :  { %16 = vsyncpa [#allocation4 + $0x1], 0 }
   0xd   :  { %17 = vsyncpa [#allocation7], 0 }
   0xe   :  { %19 = vsyncpa [#allocation7 + $0x1], 0 }
   0xf   :  { %20 = vsyncpa [#allocation10], 0 }
  0x10   :  { %21 = vsyncpa [#allocation5], 0 }
  0x11   :  { %23 = vsyncpa [#allocation5 + $0x1], 0  ;;  %s3966_s30 = smov 0   ;;  %s3968_s10 = smov 0  }
  0x12   :  { %s3970_s11 = smov 0   ;;  %s3972_s12 = smov 0  }
  0x13   :  { %s3974_s13 = smov 0   ;;  %s3976_s14 = smov 0  }
  0x14   :  { %s3978_s15 = smov 0   ;;  %s3980_s16 = smov 0  }
  0x15   :  { %s3982_s17 = smov 0   ;;  %s3984_s18 = smov 0  }
  0x16   :  { %s3986_s19 = smov 0   ;;  %s3988_s20 = smov 0  }
  0x17   :  { %s3990_s21 = smov 0   ;;  %s3992_s22 = smov 0  }
  0x18 LB: > { %4945 = sst [smem:[#allocation17_spill]] %s3849_s30  ;;  %s38_s23 = sadd.s32 1, %s3893_s20  ;;  %s3901_s22 = sphi %s3992_s22, %s29_s22   ;;  %s3897_s21 = sphi %s3990_s21, %s5022_s21   ;;  %s3893_s20 = sphi %s3988_s20, %s5021_s20   ;;  %s3889_s19 = sphi %s3986_s19, %s5020_s19   ;;  %s3885_s18 = sphi %s3984_s18, %s5019_s18   ;;  %s3881_s17 = sphi %s3982_s17, %s5018_s17   ;;  %s3877_s16 = sphi %s3980_s16, %s5027_s16   ;;  %s3873_s15 = sphi %s3978_s15, %s5026_s15   ;;  %s3869_s14 = sphi %s3976_s14, %s5016_s14   ;;  %s3865_s13 = sphi %s3974_s13, %s5025_s13   ;;  %s3861_s12 = sphi %s3972_s12, %s5024_s12   ;;  %s3857_s11 = sphi %s3970_s11, %s5023_s11   ;;  %s3853_s10 = sphi %s3968_s10, %s5014_s10   ;;  %s3849_s30 = sphi %s3966_s30, %s5013_s30  }
  0x19   : > { %4946 = sst [smem:[#allocation18_spill]] %s3853_s10  ;;  %s41_s24 = sadd.s32 1, %s3897_s21 }
  0x1a   : > { %4947 = sst [smem:[#allocation19_spill]] %s3857_s11  ;;  %p39_p0 = scmp.ge.s32.totalorder %s38_s23, 2 }
  0x1b   : > { %4948 = sst [smem:[#allocation20_spill]] %s3869_s14  ;;  %p4920_p1 = scmp.eq.s32.totalorder %s3901_s22, 0 }
  0x1c   : > { %4949 = sst [smem:[#allocation21_spill]] %s3881_s17  ;;  %s2826_s25 = sshll.u32 %s3893_s20, 3 }
  0x1d   : > { %4950 = sst [smem:[#allocation22_spill]] %s3885_s18  ;;  %s86_s26 = sadd.s32 1, %s3869_s14 }
  0x1e   : > { %4951 = sst [smem:[#allocation23_spill]] %s3889_s19  ;;  %s5029_s23 = smov (%p39_p0, %s38_s23), 0 }
  0x1f   : > { %4952 = sst [smem:[#allocation24_spill]] %s3893_s20  ;;  %s5031_s24 = smov (!%p39_p0, %s41_s24), %s3897_s21 }
  0x20   : > { %4953 = sst [smem:[#allocation25_spill]] %s3897_s21  ;;  %s46_s27 = ssub.s32 %s3893_s20, %s5029_s23 }
  0x21   : > { %4954 = sst [smem:[#allocation26_spill]] %s5029_s23  ;;  %s2827_s28 = sadd.s32 4294967295, %s2826_s25 }
  0x22   : > { %p43_p2 = scmp.ge.s32.totalorder %s5031_s24, 2  ;;  %p75_p3 = scmp.gt.s32.totalorder %s2827_s28, 0 }
  0x23   : > { %s2828_s29 = sshll.u32 %s5029_s23, 3  ;;  %p93_p4 = scmp.ne.s32.totalorder %s3869_s14, %s3865_s13 }
  0x24   : > { %s5033_s24 = smov (%p43_p2, %s5031_s24), 0  ;;  %s5035_s28 = smov (!%p75_p3, %s2827_s28), 0 }
  0x25   : > { %4955 = sst [smem:[#allocation27_spill]] %s5033_s24  ;;  %s4053_s9 = ssub.s32 %s3897_s21, %s5033_s24 }
  0x26   : > { %4956 = sst [smem:[#allocation28_spill]] %s4053_s9  ;;  %s2829_s19 = sadd.s32 4294967295, %s2828_s29 }
  0x27   : > { %s4056_s8 = sor.u32 %s46_s27, %s4053_s9  ;;  %p79_p5 = scmp.gt.s32.totalorder %s2829_s19, 0 }
  0x28   : > { %p4061_p7 = por %p93_p4, %p4920_p1  ;;  %p99_p8 = scmp.ne.s32.totalorder %s3865_s13, %s3861_s12 }
  0x29   : > { %s5037_s19 = smov (!%p79_p5, %s2829_s19), 0  ;;  %s4067_s24 = sadd.s32 8, %s2826_s25 }
  0x2a   : > { %4958 = sst [smem:[#allocation29_spill]] %s4067_s24  ;;  %s82_s7 = ssub.s32 %s5035_s28, %s5037_s19 }
  0x2b   : > { %s83_s6 = sor.u32 %s82_s7, %s4053_s9  ;;  %s4071_s27 = sadd.s32 8, %s2828_s29 }
  0x2c   : > { %p84_p10 = scmp.eq.s32.totalorder %s83_s6, 0  ;;  %p4919_p12 = scmp.lt.s32.totalorder %s3901_s22, 4 }
  0x2d   : > { %s4079_s18 = sshll.u32 %s3897_s21, 5  ;;  %s365_s3 = sand.u32 1, %s3901_s22  }
  0x2e   : > { %s4076_s5 = scalar_select %p84_p10, %s3869_s14, %s86_s26  }
  0x2f   : > { %s367_s25 = sand.u32 1, %s3869_s14   ;;  %s2843_s30 = sshll.u32 %s5035_s28, 1 }
  0x30   : > { %4959 = sst [smem:[#allocation30_spill]] %s4076_s5  ;;  %s2840_s2 = sshll.u32 %s367_s25, 4 }
  0x31   : > { %s379_s19 = sadd.s32 %s2843_s30, %s4079_s18  ;;  %s369_s7 = scalar_lea.vmem [#allocation6], %s2840_s2 }
  0x32   : > { %s2845_s10 = sshll.u32 %s379_s19, 7  ;;  %s382_s29 = sshll.u32 %s369_s7, 4  ;;  %s4089_s29 = int_to_ptr.vmem [resolvable:$true] %s382_s29 }
  0x33   : > { %s4960_s1 = sld [smem:[#allocation34_spill]]  ;;  %p4095_p13 = pnand %p4919_p12, %p4061_p7 }
  0x34   : > { %s4099_s2 = scalar_lea.sflag [#allocation7], %s365_s3 }
  0x35   : > { %p3627_p2 = pneg %p4095_p13 }
  0x39   : > { %s4087_s11 = scalar_lea.hbm %s4960_s1, %s2845_s10  ;;  %s3630_s23 = scalar_lea.hbm %s4960_s1, 8192 }
  0x3a   : > { %s3625_s30 = scalar_lea.hbm %s4087_s11, 256  ;;  %p3631_p5 = scmp.lt.u32.totalorder %s4087_s11, %s4960_s1 }
  0x3b   : > { %p3626_p0 = scmp.ne.s32.totalorder %s4087_s11, %s3625_s30  ;;  %p3632_p7 = scmp.lt.u32.totalorder %s3630_s23, %s3625_s30 }
  0x3c   : > { %p3634_p11 = scmp.lt.u32.totalorder %s3625_s30, %s4087_s11 }
  0x3d   : > { %p3628_p3 = pnand %p3627_p2, %p3626_p0  ;;  %p3633_p10 = por %p3632_p7, %p3631_p5 }
  0x3f   : > { %p3629_p4 = pneg %p3628_p3  ;;  %p3635_p9 = por %p3634_p11, %p3633_p10 }
  0x41   : > { %p3636_p12 = pnand %p3635_p9, %p3629_p4 }
  0x43   : > { %3639 = shalt.err (!%p3636_p12)
}
  0x44   : > { %s3640_s3 = scalar_lea.vmem %s4089_s29, 256  ;;  %s3903_s28 = smov [#allocation6]  }
  0x45   : > { %p3641_p0 = scmp.ne.s32.totalorder %s4089_s29, %s3640_s3  ;;  %s3645_s25 = sshll.u32 %s3903_s28, 4  ;;  %s3646_s25 = int_to_ptr.vmem [resolvable:$false] %s3645_s25 }
  0x46   : > { %s3647_s19 = scalar_lea.vmem %s3646_s25, 512  ;;  %p3648_p6 = scmp.lt.s32.totalorder %s4089_s29, %s3646_s25 }
  0x47   : > { %p3643_p3 = pnand %p3641_p0, %p3627_p2  ;;  %p3649_p5 = scmp.lt.s32.totalorder %s3647_s19, %s3640_s3 }
  0x49   : > { %p3644_p1 = pneg %p3643_p3  ;;  %p3650_p7 = por %p3649_p5, %p3648_p6 }
  0x4b   : > { %p3651_p11 = pnand %p3650_p7, %p3644_p1 }
  0x4d   : > { %3654 = shalt.err (!%p3651_p11)
}
  0x4e   : > { %s4924_s7 = smov 128   ;;  %s4926_s30 = smov 8  }
  0x4f   : > { %3470 = dma.hbm_to_vmem [thread:$0]  (!%p4095_p13), %s4087_s11, 256, %s4089_s29, %s4099_s2, %s4924_s7, %s4924_s7, %s4926_s30  }
  0x50   : > { %s4131_s9 = sadd.s32 4294967295, %s3901_s22   ;;  %p2832_p1 = scmp.ge.s32.totalorder %s3901_s22, 1 }
  0x51   : > { %p4921_p6 = scmp.eq.s32.totalorder %s4131_s9, 0  ;;  %p300_p12 = scmp.lt.s32.totalorder %s3901_s22, 5 }
  0x52   : > { %s3906_s11 = smov [#allocation9]   ;;  %s4965_s4 = sld [smem:[#allocation37_spill]] }
  0x53   : > { %p4142_p2 = por %p99_p8, %p4921_p6  ;;  %p4146_p4 = pnand %p2832_p1, %p300_p12 }
  0x54   : > { %s315_s29 = sshll.u32 %s3906_s11, 4  ;;  %s316_s29 = int_to_ptr.vmem [resolvable:$true] %s315_s29 }
  0x55   : > { %s4962_s10 = scalar_select %p4142_p2, 1, 0 }
  0x56   : > { %s4963_s6 = scalar_select %p4146_p4, 1, 0 }
  0x57   : > { %p3460_p13 = pneg %p4146_p4 }
  0x58   : > { %s3655_s26 = scalar_lea.hbm %s4965_s4, 2304 }
  0x59   : > { %p4154_p10 = pnand %p3460_p13, %p4921_p6  ;;  %p3656_p8 = scmp.ne.s32.totalorder %s4965_s4, %s3655_s26 }
  0x5a   : > { %p3662_p7 = scmp.lt.u32.totalorder %s3655_s26, %s4965_s4 }
  0x5b   : > { %p3657_p0 = pneg %p4154_p10 }
  0x5d   : > { %p3658_p3 = pnand %p3657_p0, %p3656_p8 }
  0x5f   : > { %p3659_p5 = pneg %p3658_p3 }
  0x61   : > { %p3664_p11 = pnand %p3662_p7, %p3659_p5 }
  0x63   : > { %3667 = shalt.err (!%p3664_p11)
}
  0x64   : > { %s3668_s11 = scalar_lea.vmem %s316_s29, 2304  ;;  %p3676_p9 = scmp.lt.s32.totalorder %s316_s29, %s316_s29 }
  0x65   : > { %p3669_p1 = scmp.ne.s32.totalorder %s316_s29, %s3668_s11  ;;  %p3677_p6 = scmp.lt.s32.totalorder %s3668_s11, %s3668_s11 }
  0x67   : > { %p3671_p12 = pnand %p3669_p1, %p3657_p0  ;;  %p3678_p2 = por %p3677_p6, %p3676_p9 }
  0x69   : > { %p3672_p13 = pneg %p3671_p12 }
  0x6b   : > { %p3679_p4 = pnand %p3678_p2, %p3672_p13 }
  0x6d   : > { %3682 = shalt.err (!%p3679_p4)
}
  0x6e   : > { %s3907_s12 = smov 64   ;;  %s3908_s24 = smov 4  }
  0x6f   : > { %3463 = dma.hbm_to_vmem [thread:$0]  (!%p4154_p10), %s4965_s4, 2304, %s316_s29, [#allocation10], %s3907_s12, %s3907_s12, %s3908_s24  }
  0x70   : > { %s2825_s28 = sadd.s32 4294967294, %s3901_s22   ;;  %s50_s25 = sadd.s32 1, %s3881_s17 }
  0x71   : > { %p4966_p6 = scmp.eq.s32.totalorder %s4056_s8, 0  ;;  %p57_p9 = scmp.ne.s32.totalorder %s3881_s17, %s3877_s16 }
  0x72   : > { %p63_p2 = scmp.ne.s32.totalorder %s3877_s16, %s3873_s15  ;;  %p293_p4 = scmp.eq.s32.totalorder %s2825_s28, 3 }
  0x73   : > { %s4179_s19 = scalar_select %p4966_p6, %s3881_s17, %s50_s25  }
  0x74   : > { %s341_s11 = sand.u32 1, %s3881_s17   ;;  %p4968_p8 = scmp.eq.s32.totalorder %s3901_s22, 0 }
  0x75   : > { %4967 = sst [smem:[#allocation31_spill]] %s4179_s19  ;;  %p4969_p3 = scmp.eq.s32.totalorder %s4131_s9, 0 }
  0x76   : > { %p59_p0 = por %p4968_p8, %p57_p9  ;;  %p4971_p7 = scmp.eq.s32.totalorder %s4131_s9, 3 }
  0x77   : > { %p4190_p5 = por %p4969_p3, %p63_p2  ;;  %p4200_p10 = por %p293_p4, %p63_p2 }
  0x78   : > { %p4196_p11 = por %p4971_p7, %p57_p9  ;;  %s2835_s23 = sshll.u32 %s341_s11, 7 }
  0x79   : > { %s4973_s8 = scalar_select %p4200_p10, 1, 0 }
  0x7a   : > { %s4972_s29 = scalar_select %p4196_p11, 1, 0 }
  0x7b   : > { %4974 = sst [smem:[#allocation32_spill]] %s4973_s8  ;;  %s2976_s12 = sshll.u32 %s3893_s20, 4 }
  0x7c   : > { %s352_s24 = sadd.s32 %s2976_s12, %s4079_s18  ;;  %s345_s26 = scalar_lea.vmem [#allocation3], %s2835_s23 }
  0x7d   : > { %s355_s3 = sshll.u32 %s345_s26, 4  ;;  %s2839_s28 = sshll.u32 %s352_s24, 7  ;;  %s4206_s3 = int_to_ptr.vmem [resolvable:$true] %s355_s3 }
  0x7e   : > { %s4975_s0 = sld [smem:[#allocation33_spill]]  ;;  %p4976_p1 = scmp.lt.s32.totalorder %s3901_s22, 4 }
  0x7f   : > { %s4219_s23 = scalar_lea.sflag [#allocation4], %s341_s11 }
  0x80   : > { %p4215_p12 = pnand %p4976_p1, %p59_p0 }
  0x82   : > { %p3685_p6 = pneg %p4215_p12 }
  0x84   : > { %s4211_s1 = scalar_lea.hbm %s4975_s0, %s2839_s28  ;;  %s3688_s26 = scalar_lea.hbm %s4975_s0, 8192 }
  0x85   : > { %s3683_s12 = scalar_lea.hbm %s4211_s1, 2048  ;;  %p3689_p4 = scmp.lt.u32.totalorder %s4211_s1, %s4975_s0 }
  0x86   : > { %p3684_p13 = scmp.ne.s32.totalorder %s4211_s1, %s3683_s12  ;;  %p3690_p8 = scmp.lt.u32.totalorder %s3688_s26, %s3683_s12 }
  0x87   : > { %p3692_p3 = scmp.lt.u32.totalorder %s3683_s12, %s4211_s1 }
  0x88   : > { %p3686_p9 = pnand %p3685_p6, %p3684_p13  ;;  %p3691_p0 = por %p3690_p8, %p3689_p4 }
  0x8a   : > { %p3687_p2 = pneg %p3686_p9  ;;  %p3693_p7 = por %p3692_p3, %p3691_p0 }
  0x8c   : > { %p3694_p1 = pnand %p3693_p7, %p3687_p2 }
  0x8e   : > { %3697 = shalt.err (!%p3694_p1)
}
  0x8f   : > { %s3698_s11 = scalar_lea.vmem %s4206_s3, 2048  ;;  %s3909_s30 = smov [#allocation3]  }
  0x90   : > { %p3699_p13 = scmp.ne.s32.totalorder %s4206_s3, %s3698_s11  ;;  %s3703_s24 = sshll.u32 %s3909_s30, 4  ;;  %s3704_s24 = int_to_ptr.vmem [resolvable:$false] %s3703_s24 }
  0x91   : > { %s3705_s28 = scalar_lea.vmem %s3704_s24, 4096  ;;  %p3706_p11 = scmp.lt.s32.totalorder %s4206_s3, %s3704_s24 }
  0x92   : > { %p3701_p9 = pnand %p3699_p13, %p3685_p6  ;;  %p3707_p4 = scmp.lt.s32.totalorder %s3705_s28, %s3698_s11 }
  0x94   : > { %p3702_p10 = pneg %p3701_p9  ;;  %p3708_p8 = por %p3707_p4, %p3706_p11 }
  0x96   : > { %p3709_p0 = pnand %p3708_p8, %p3702_p10 }
  0x98   : > { %3712 = shalt.err (!%p3709_p0)
}
  0x99   : > { %s4978_s12 = smov 8   ;;  %s4979_s26 = smov 128  }
  0x9a   : > { %s4980_s25 = sld [smem:[#allocation19_spill]]  ;;  %s4981_s0 = sld [smem:[#allocation29_spill]] }
  0x9b   : > { %s4982_s30 = sld [smem:[#allocation18_spill]]  ;;  %s4983_s24 = sld [smem:[#allocation17_spill]] }
  0x9c   : > { %s4984_s11 = sld [smem:[#allocation28_spill]]  ;;  %p4986_p10 = scmp.lt.s32.totalorder %s4071_s27, 15 }
  0x9d   : > { %3467 = dma.hbm_to_vmem [thread:$0]  (!%p4215_p12), %s4211_s1, 2048, %s4206_s3, %s4219_s23, %s4979_s26, %s4979_s26, %s4978_s12  }
  0x9e   : > { %s5041_s27 = smov (!%p4986_p10, %s4071_s27), 15  ;;  %p4987_p3 = scmp.eq.s32.totalorder %s3901_s22, 0 }
  0x9f   : > { %p4988_p13 = scmp.eq.s32.totalorder %s4131_s9, 0  ;;  %s4990_s14 = sld [smem:[#allocation35_spill]] }
  0xa0   : > { %s122_s4 = sadd.s32 1, %s4980_s25  ;;  %p4985_p11 = scmp.lt.s32.totalorder %s4981_s0, 15 }
  0xa1   : > { %p129_p6 = scmp.ne.s32.totalorder %s4980_s25, %s4982_s30  ;;  %p135_p2 = scmp.ne.s32.totalorder %s4982_s30, %s4983_s24 }
  0xa2   : > { %s5039_s0 = smov (!%p4985_p11, %s4981_s0), 15  ;;  %s394_s21 = sand.u32 1, %s4980_s25  }
  0xa3   : > { %s118_s28 = ssub.s32 %s5039_s0, %s5041_s27  ;;  %p131_p7 = por %p129_p6, %p4987_p3 }
  0xa4   : > { %s119_s20 = sor.u32 %s118_s28, %s4984_s11  ;;  %p4267_p9 = por %p135_p2, %p4988_p13 }
  0xa5   : > { %p120_p1 = scmp.eq.s32.totalorder %s119_s20, 0  ;;  %s2846_s1 = sshll.u32 %s394_s21, 4 }
  0xa6   : > { %s4989_s19 = scalar_select %p4267_p9, 1, 0 }
  0xa7   : > { %s2848_s3 = sshll.u32 %s5039_s0, 1  ;;  %s5043_s25 = smov (!%p120_p1, %s4980_s25), %s122_s4 }
  0xa8   : > { %s406_s23 = sadd.s32 %s2848_s3, %s4079_s18  ;;  %s396_s5 = scalar_lea.vmem [#allocation8], %s2846_s1 }
  0xa9   : > { %s2850_s17 = sshll.u32 %s406_s23, 7  ;;  %s409_s30 = sshll.u32 %s396_s5, 4  ;;  %s4280_s30 = int_to_ptr.vmem [resolvable:$true] %s409_s30 }
  0xaa   : > { %s4991_s8 = smov %s4990_s14  ;;  %s4278_s11 = scalar_lea.hbm %s4990_s14, %s2850_s17 }
  0xab   : > { %p4992_p12 = scmp.lt.s32.totalorder %s3901_s22, 4  ;;  %s3713_s18 = scalar_lea.hbm %s4278_s11, 256 }
  0xac   : > { %p3714_p8 = scmp.ne.s32.totalorder %s4278_s11, %s3713_s18  ;;  %s3718_s17 = scalar_lea.hbm %s4991_s8, 8192 }
  0xad   : > { %p4284_p4 = pnand %p4992_p12, %p131_p7  ;;  %p3719_p6 = scmp.lt.u32.totalorder %s4278_s11, %s4991_s8 }
  0xae   : > { %p3720_p2 = scmp.lt.u32.totalorder %s3718_s17, %s3713_s18  ;;  %p3722_p7 = scmp.lt.u32.totalorder %s3713_s18, %s4278_s11 }
  0xaf   : > { %p3715_p0 = pneg %p4284_p4 }
  0xb0   : > { %p3721_p3 = por %p3720_p2, %p3719_p6 }
  0xb1   : > { %p3716_p11 = pnand %p3715_p0, %p3714_p8 }
  0xb2   : > { %p3723_p1 = por %p3722_p7, %p3721_p3 }
  0xb3   : > { %p3717_p10 = pneg %p3716_p11 }
  0xb5   : > { %p3724_p13 = pnand %p3723_p1, %p3717_p10 }
  0xb7   : > { %3727 = shalt.err (!%p3724_p13)
}
  0xb8   : > { %s3728_s4 = scalar_lea.vmem %s4280_s30, 256  ;;  %s3910_s28 = smov [#allocation8]  }
  0xb9   : > { %p3729_p12 = scmp.ne.s32.totalorder %s4280_s30, %s3728_s4  ;;  %s3733_s1 = sshll.u32 %s3910_s28, 4  ;;  %s3734_s1 = int_to_ptr.vmem [resolvable:$false] %s3733_s1 }
  0xba   : > { %s3735_s3 = scalar_lea.vmem %s3734_s1, 512  ;;  %p3736_p9 = scmp.lt.s32.totalorder %s4280_s30, %s3734_s1 }
  0xbb   : > { %p3731_p8 = pnand %p3729_p12, %p3715_p0  ;;  %p3737_p6 = scmp.lt.s32.totalorder %s3735_s3, %s3728_s4 }
  0xbd   : > { %p3732_p11 = pneg %p3731_p8  ;;  %p3738_p2 = por %p3737_p6, %p3736_p9 }
  0xbf   : > { %p3739_p3 = pnand %p3738_p2, %p3732_p11 }
  0xc1   : > { %3742 = shalt.err (!%p3739_p3)
}
  0xc2   : > { %3473 = dma.hbm_to_vmem [thread:$0]  (!%p4284_p4), %s4278_s11, 256, %s4280_s30, %s4099_s2, %s4979_s26, %s4979_s26, %s4978_s12  }
  0xc3   : > { %p4994_p0 = scmp.ne.s32.totalorder %s4963_s6, 0 }
  0xc4   : > { %s4320_s23 = sand.u32 (!%p4994_p0), 1, %s3877_s16  }
  0xc5   : > { %421 = sbr.rel (%p4994_p0) target bundleno = 874 (0x36a), region = 56  ;;  %s2852_s24 = sshll.u32 (!%p4994_p0), %s4320_s23, 7 }
  0xc6   : > { %s424_s27 = scalar_lea.sflag (!%p4994_p0), [#allocation4], %s4320_s23  ;;  %s4326_s0 = scalar_lea.vmem (!%p4994_p0), [#allocation3], %s2852_s24 }
  0xcc   : > { %3828 = dma.done.wait (%p4190_p5), %s424_s27, 2048  }
  0xcd   : > { %3830 = vsyncadd (%p4190_p5), %s424_s27, 4294965248  ;;  %s432_s2 = sand.u32 1, %s4131_s9   ;;  %s434_s6 = sand.u32 1, %s3865_s13  }
  0xce   : > { %s4334_s12 = sshll.u32 %s434_s6, 4  ;;  %s433_s26 = scalar_lea.sflag [#allocation7], %s432_s2 }
  0xcf   : > { %s436_s30 = scalar_lea.vmem [#allocation6], %s4334_s12  ;;  %p4995_p9 = scmp.ne.s32.totalorder %s4962_s10, 0 }
  0xd1   : > { %3832 = dma.done.wait (%p4995_p9), %s433_s26, 256  }
  0xd2   : > { %3834 = vsyncadd (%p4995_p9), %s433_s26, 4294967040  ;;  %s4996_s11 = sld [smem:[#allocation18_spill]]  ;;  %p4997_p5 = scmp.ne.s32.totalorder %s4989_s19, 0 }
  0xd8   : > { %s443_s18 = sand.u32 1, %s4996_s11  }
  0xd9   : > { %s4342_s7 = sshll.u32 %s443_s18, 4 }
  0xda   : > { %s445_s5 = scalar_lea.vmem [#allocation8], %s4342_s7 }
  0xdb   : > { %3836 = dma.done.wait (%p4997_p5), %s433_s26, 256  }
  0xdc   : > { %3838 = vsyncadd (%p4997_p5), %s433_s26, 4294967040  ;;  %p4998_p4 = scmp.eq.s32.totalorder %s4131_s9, 0 }
  0xde   : > { %3840 = dma.done.wait (%p4998_p4), [#allocation10], 2304   ;;  %p4999_p10 = pmov %p4998_p4 }
  0xdf   : > { %vm521_vm0 = vcmask 261120   ;;  %v3911_v0 = vmov 0.0   ;;  %vm3912_vm1 = vmmov 0   ;;  %s5000_s19 = sld [smem:[#allocation36_spill]]  ;;  %v542_v4 = vld [vmem:[%s4326_s0] sm:$0xff]  ;;  %v543_v5 = vld [vmem:[%s4326_s0 + $0x8] sm:$0xff] }
  0xe0   : > { %3842 = vsyncadd (%p4999_p10), [#allocation10], 4294964992  ;;  %3128 = vmatprep.subr.bf16.mxu1 %v3911_v0  ;;  %3136 = vmatprep.mubr.msk.bf16.mxu1 %vm3912_vm1, %v3911_v0  ;;  %522 = vst.msk [vmem:[#allocation2] sm:$0xff] %vm521_vm0, %v3911_v0  ;;  %vm590_vm2 = vcmask 523264   ;;  %v558_v6 = vpack.c.bf16 %v543_v5, %v542_v4  ;;  %v544_v8 = vld [vmem:[%s4326_s0 + $0x10] sm:$0xff]  ;;  %v545_v9 = vld [vmem:[%s4326_s0 + $0x18] sm:$0xff] }
  0xe1   : > { %523 = vst.msk [vmem:[#allocation2 + $0x20] sm:$0xff] %vm521_vm0, %v3911_v0  ;;  %524 = vst.msk [vmem:[#allocation2 + $0x40] sm:$0xff] %vm521_vm0, %v3911_v0  ;;  %v546_v10 = vld [vmem:[%s4326_s0 + $0x20] sm:$0xff]  ;;  %v884_v12 = vld [vmem:[%s445_s5 + $0x8] sm:$0xff]  ;;  %v559_v15 = vpack.c.bf16 %v545_v9, %v544_v8  ;;  %s5002_s3 = sld [smem:[#allocation22_spill]]  ;;  %s5004_s18 = sld [smem:[#allocation39_spill]] }
  0xe2   : > { %525 = vst.msk [vmem:[#allocation2 + $0x60] sm:$0xff] %vm521_vm0, %v3911_v0  ;;  %526 = vst.msk [vmem:[#allocation2 + $0x80] sm:$0xff] %vm521_vm0, %v3911_v0  ;;  %3100 = vmatprep.mubr.msk.bf16.mxu0 %vm590_vm2, %v558_v6  ;;  %v883_v11 = vld [vmem:[%s445_s5] sm:$0xff]  ;;  %v547_v13 = vld [vmem:[%s4326_s0 + $0x28] sm:$0xff]  ;;  %s5003_s12 = sld [smem:[#allocation38_spill]]  ;;  %s5006_s20 = sld [smem:[#allocation41_spill]] }
  0xe3   : > { %527 = vst.msk [vmem:[#allocation2 + $0xa0] sm:$0xff] %vm521_vm0, %v3911_v0  ;;  %528 = vst.msk [vmem:[#allocation2 + $0xc0] sm:$0xff] %vm521_vm0, %v3911_v0  ;;  %v885_v14 = vpack.c.bf16 %v884_v12, %v883_v11  ;;  %v560_v16 = vpack.c.bf16 %v547_v13, %v546_v10  ;;  %v548_v17 = vld [vmem:[%s4326_s0 + $0x30] sm:$0xff]  ;;  %v549_v18 = vld [vmem:[%s4326_s0 + $0x38] sm:$0xff]  ;;  %s4742_s21 = scalar_lea.vmem [#allocation11], %s2852_s24  ;;  %s5007_s24 = sld [smem:[#allocation23_spill]] }
  0xe4   : > { %529 = vst.msk [vmem:[#allocation2 + $0xe0] sm:$0xff] %vm521_vm0, %v3911_v0  ;;  %530 = vst.msk [vmem:[#allocation2 + $0x100] sm:$0xff] %vm521_vm0, %v3911_v0  ;;  %v550_v19 = vld [vmem:[%s4326_s0 + $0x40] sm:$0xff]  ;;  %v551_v20 = vld [vmem:[%s4326_s0 + $0x48] sm:$0xff]  ;;  %v561_v21 = vpack.c.bf16 %v549_v18, %v548_v17  ;;  %s2675_s2 = sshll.u32 %s4742_s21, 4  ;;  %p5009_p12 = scmp.ne.s32.totalorder %s4972_s29, 0  ;;  %s4814_s2 = int_to_ptr.vmem [resolvable:$true] %s2675_s2 }
  0xe5   : > { %531 = vst.msk [vmem:[#allocation2 + $0x120] sm:$0xff] %vm521_vm0, %v3911_v0  ;;  %532 = vst.msk [vmem:[#allocation2 + $0x18] sm:$0xff] %vm521_vm0, %v3911_v0  ;;  %s5001_s4 = smov %s5000_s19  ;;  %v3603_v1 = vld [vmem:[%s5000_s19] sm:$0xff]   ;;  %v562_v22 = vpack.c.bf16 %v551_v20, %v550_v19  ;;  %v552_v23 = vld [vmem:[%s4326_s0 + $0x50] sm:$0xff]  ;;  %s5005_s19 = sld [smem:[#allocation40_spill]] }
  0xe6   : > { %533 = vst.msk [vmem:[#allocation2 + $0x38] sm:$0xff] %vm521_vm0, %v3911_v0  ;;  %534 = vst.msk [vmem:[#allocation2 + $0x58] sm:$0xff] %vm521_vm0, %v3911_v0  ;;  %v3604_v2 = vld [vmem:[%s5001_s4 + $0x8] sm:$0xff]   ;;  %3092 = vmatprep.subr.bf16.mxu0 %v3603_v1  ;;  %3129 = vmatpush3.bf16.msra.mxu1 %v3603_v1  ;;  %v3605_v3 = vld [vmem:[%s5001_s4 + $0x10] sm:$0xff]   ;;  %s3743_s11 = scalar_lea.vmem %s4814_s2, 2048 }
  0xe7   : > { %535 = vst.msk [vmem:[#allocation2 + $0x78] sm:$0xff] %vm521_vm0, %v3911_v0  ;;  %536 = vst.msk [vmem:[#allocation2 + $0x98] sm:$0xff] %vm521_vm0, %v3911_v0  ;;  %3093 = vmatpush3.bf16.msra.mxu0 %v3603_v1  ;;  %3130 = vmatprep.subr.bf16.mxu1 %v3911_v0  ;;  %v3606_v7 = vld [vmem:[%s5001_s4 + $0x18] sm:$0xff]   ;;  %v554_v25 = vld [vmem:[%s4326_s0 + $0x60] sm:$0xff]  ;;  %p508_p7 = scmp.lt.s32.totalorder %s5002_s3, 1  ;;  %p505_p1 = scmp.gt.s32.totalorder %s5002_s3, 0 }
  0xe8   : > { %537 = vst.msk [vmem:[#allocation2 + $0xb8] sm:$0xff] %vm521_vm0, %v3911_v0  ;;  %538 = vst.msk [vmem:[#allocation2 + $0xd8] sm:$0xff] %vm521_vm0, %v3911_v0  ;;  %3094 = vmatprep.subr.bf16.mxu0 %v3604_v2  ;;  %v553_v24 = vld [vmem:[%s4326_s0 + $0x58] sm:$0xff]  ;;  %v555_v26 = vld [vmem:[%s4326_s0 + $0x68] sm:$0xff]  ;;  %s2979_s28 = sshll.u32 %s5002_s3, 4  ;;  %p3744_p13 = scmp.ne.s32.totalorder %s4814_s2, %s3743_s11 }
  0xe9   : > { %539 = vst.msk [vmem:[#allocation2 + $0xf8] sm:$0xff] %vm521_vm0, %v3911_v0  ;;  %540 = vst.msk [vmem:[#allocation2 + $0x118] sm:$0xff] %vm521_vm0, %v3911_v0  ;;  %v563_v27 = vpack.c.bf16 %v553_v24, %v552_v23  ;;  %v564_v28 = vpack.c.bf16 %v555_v26, %v554_v25  ;;  %v556_v29 = vld [vmem:[%s4326_s0 + $0x70] sm:$0xff]  ;;  %v557_v30 = vld [vmem:[%s4326_s0 + $0x78] sm:$0xff]  ;;  %s509_s27 = scalar_select %p508_p7, 1, 0 }
  0xea   : > { %541 = vst.msk [vmem:[#allocation2 + $0x138] sm:$0xff] %vm521_vm0, %v3911_v0  ;;  %3131 = vmatpush3.bf16.msra.mxu1 %v3604_v2  ;;  %v565_v31 = vpack.c.bf16 %v557_v30, %v556_v29  ;;  %v821_v32 = vld [vmem:[%s436_s30] sm:$0xff]  ;;  %v822_v33 = vld [vmem:[%s436_s30 + $0x8] sm:$0xff]  ;;  %s4538_s7 = scalar_select %p505_p1, 1, 0 }
  0xeb   : > { %3095 = vmatpush3.bf16.msra.mxu0 %v3604_v2  ;;  %3132 = vmatprep.subr.bf16.mxu1 %v3911_v0  ;;  %v823_v34 = vpack.c.bf16 %v822_v33, %v821_v32  ;;  %v3607_v35 = vld [vmem:[#allocation9 + $0x40] sm:$0xff]   ;;  %v3608_v36 = vld [vmem:[#allocation9 + $0x48] sm:$0xff]   ;;  %v4451_v37 = vld [vmem:[#allocation9 + $0x50] sm:$0xff]   ;;  %s510_s26 = scvt.s32.f32 %s509_s27  ;;  %s2968_s1 = sshll.u32 %s5007_s24, 5 }
  0xec   : > { %3096 = vmatprep.subr.bf16.mxu0 %v3605_v3  ;;  %v3611_v38 = vld [vmem:[#allocation9 + $0x10] sm:$0xff]   ;;  %v3612_v39 = vld [vmem:[#allocation9 + $0x18] sm:$0xff]   ;;  %v4454_v40 = vld [vmem:[#allocation9] sm:$0xff]   ;;  %s507_s5 = scvt.s32.f32 %s4538_s7  ;;  %s2672_s3 = sadd.s32 %s2979_s28, %s2968_s1 }
  0xed   : > { %v4461_v41 = vld [vmem:[%s5003_s12] ss:$0 sm:$0xff]  ;;  %v940_v58 = vstv %s510_s26  ;;  %s2969_s27 = sshll.u32 %s2672_s3, 7  ;;  %s5008_s26 = sld [smem:[#allocation42_spill]] }
  0xee   : > { %3133 = vmatpush3.bf16.msra.mxu1 %v3605_v3  ;;  %v4466_v43 = vld [vmem:[%s5004_s18] ss:$0 sm:$0xff]  ;;  %p3745_p8 = pnand %p3744_p13, %p5009_p12  ;;  %s3913_s18 = smov [#allocation11]  }
  0xef   : > { %3097 = vmatpush3.bf16.msra.mxu0 %v3605_v3  ;;  %3134 = vmatprep.subr.bf16.mxu1 %v3911_v0  ;;  %s3747_s7 = sshll.u32 %s3913_s18, 4  ;;  %s3748_s7 = int_to_ptr.vmem [resolvable:$false] %s3747_s7 }
  0xf0   : > { %3098 = vmatprep.subr.bf16.mxu0 %v3606_v7  ;;  %p3746_p11 = pneg %p3745_p8  ;;  %p3750_p6 = scmp.lt.s32.totalorder %s4814_s2, %s3748_s7 }
  0xf2   : > { %3135 = vmatpush3.bf16.msra.mxu1 %v3606_v7 }
  0xf3   : > { %3099 = vmatpush3.bf16.msra.mxu0 %v3606_v7  ;;  %3220 = vmatprep.subr.bf16.mxu1 %v3607_v35  ;;  %s4812_s30 = scalar_lea.hbm %s5008_s26, %s2969_s27 }
  0xf4   : > { %3116 = vmatprep.subr.bf16.mxu0 %v3911_v0 }
  0xf5   : > { %3137 = vmatmul.mubr.msk.bf16.vlgmr.msra.gmra.mrb[0].mxu1 %vm590_vm2, %v885_v14 }
  0xf6   : > { %3101 = vmatmul.mubr.msk.bf16.vlgmr.msra.gmra.mrb[0].mxu0 %vm590_vm2, %v559_v15  ;;  %3221 = vmatpush3.bf16.msra.mxu1 %v3607_v35 }
  0xf7   : > { %3117 = vmatpush3.bf16.msra.mxu0 %v3603_v1  ;;  %3104 = vmatprep.mubr.msk.bf16.mxu0 %vm590_vm2, %v560_v16 }
  0xf8   : > { %3118 = vmatprep.subr.bf16.mxu0 %v3911_v0  ;;  %3222 = vmatprep.subr.bf16.mxu1 %v3608_v36 }
  0xfa   : > { %3223 = vmatpush3.bf16.msra.mxu1 %v3608_v36 }
  0xfb   : > { %3119 = vmatpush3.bf16.msra.mxu0 %v3604_v2  ;;  %3240 = vmatprep.subr.bf16.mxu1 %v4451_v37 }
  0xfc   : > { %3120 = vmatprep.subr.bf16.mxu0 %v3911_v0 }
  0xfe   : > { %3105 = vmatmul.mubr.msk.bf16.gmra.mrb[4].mxu0 %vm590_vm2, %v561_v21 }
  0xff   : > { %3108 = vmatprep.mubr.msk.bf16.mxu0 %vm590_vm2, %v562_v22  ;;  %3121 = vmatpush3.bf16.msra.mxu0 %v3605_v3 }
 0x100   : > { %3122 = vmatprep.subr.bf16.mxu0 %v3911_v0 }
 0x103   : > { %3123 = vmatpush3.bf16.msra.mxu0 %v3606_v7 }
 0x104   : > { %3140 = vmatprep.subr.bf16.mxu0 %v3611_v38 }
 0x106   : > { %3109 = vmatmul.mubr.msk.bf16.gmra.mrb[8].mxu0 %vm590_vm2, %v563_v27 }
 0x107   : > { %3112 = vmatprep.mubr.msk.bf16.mxu0 %vm590_vm2, %v564_v28 }
 0x10e   : > { %3113 = vmatmul.mubr.msk.bf16.gmra.mrb[12].mxu0 %vm590_vm2, %v565_v31 }
 0x10f   : > { %3124 = vmatprep.mubr.msk.bf16.mxu0 %vm3912_vm1, %v3911_v0 }
 0x116   : > { %3125 = vmatmul.mubr.msk.bf16.vlgmr.msra.gmra.mrb[16].mxu0 %vm590_vm2, %v823_v34 }
 0x117   : > { %3141 = vmatpush3.bf16.msra.mxu0 %v3611_v38 }
 0x118   : > { %3142 = vmatprep.subr.bf16.mxu0 %v3612_v39 }
 0x11b   : > { %3143 = vmatpush3.bf16.msra.mxu0 %v3612_v39 }
 0x11c   : > { %3160 = vmatprep.subr.bf16.mxu0 %v4454_v40 }
 0x1c8   : > { %v923_v42 = vpop.f32.mrb[0].mxu1 }
 0x1c9   : > { %v3102_v44 = vpop.f32.mrb[0].mxu0  ;;  %v930_v45 = vmul.f32 %v4461_v41, %v923_v42  ;;  %v3138_v46 = vpop.f32.mrb[1].mxu1 }
 0x1ca   : > { %v720_v47 = vmul.f32 %v3102_v44, %v4461_v41  ;;  %v649_v48 = vpop.f32.mrb[1].mxu0  ;;  %v926_v49 = vpop.f32.mrb[2].mxu1 }
 0x1cb   : > { %v718_v50 = vmul.f32 %v4461_v41, %v649_v48  ;;  %v3103_v51 = vpop.f32.mrb[2].mxu0  ;;  %v932_v52 = vadd.f32 %v4466_v43, %v930_v45  ;;  %v931_v53 = vmul.f32 %v4461_v41, %v926_v49  ;;  %v3139_v54 = vpop.f32.mrb[3].mxu1 }
 0x1cc   : > { %v742_v55 = vadd.f32 %v4466_v43, %v720_v47  ;;  %v721_v56 = vmul.f32 %v3103_v51, %v4461_v41  ;;  %v652_v57 = vpop.f32.mrb[3].mxu0  ;;  %v3610_v54 = vld [vmem:[#allocation9 + $0x58] sm:$0xff]  }
 0x1cd   : > { %v740_v59 = vadd.f32 %v4466_v43, %v718_v50  ;;  %v719_v60 = vmul.f32 %v4461_v41, %v652_v57  ;;  %vm934_vm3 = vcmp.gt.f32.partialorder %v932_v52, 0.0  ;;  %v936_v61 = vmul.f32 0.1, %v932_v52 }
 0x1ce   : > { %vm758_vm4 = vcmp.gt.f32.partialorder %v742_v55, 0.0  ;;  %v774_v62 = vmul.f32 0.1, %v742_v55  ;;  %v743_v63 = vadd.f32 %v4466_v43, %v721_v56  ;;  %v933_v0 = vadd.f32 %v4466_v43, %v931_v53 }
 0x1cf   : > { %vm756_vm5 = vcmp.gt.f32.partialorder %v740_v59, 0.0  ;;  %v772_v1 = vmul.f32 0.1, %v740_v59  ;;  %v741_v2 = vadd.f32 %v4466_v43, %v719_v60  ;;  %v938_v3 = vsel %vm934_vm3, %v932_v52, %v936_v61 }
 0x1d0   : > { %v790_v4 = vsel %vm758_vm4, %v742_v55, %v774_v62  ;;  %vm759_vm6 = vcmp.gt.f32.partialorder %v743_v63, 0.0  ;;  %v775_v5 = vmul.f32 0.1, %v743_v63  ;;  %v941_v6 = vmul.f32 %v940_v58, %v938_v3 }
 0x1d1   : > { %807 = vst.msk [vmem:[#allocation2 + $0x48] sm:$0xff] %vm521_vm0, %v790_v4  ;;  %v788_v7 = vsel %vm756_vm5, %v740_v59, %v772_v1  ;;  %vm757_vm7 = vcmp.gt.f32.partialorder %v741_v2, 0.0  ;;  %v773_v8 = vmul.f32 0.1, %v741_v2  ;;  %v3106_v9 = vpop.f32.mrb[4].mxu0  ;;  %vm935_vm8 = vcmp.gt.f32.partialorder %v933_v0, 0.0 }
 0x1d2   : > { %805 = vst.msk [vmem:[#allocation2 + $0x28] sm:$0xff] %vm521_vm0, %v788_v7  ;;  %v791_v10 = vsel %vm759_vm6, %v743_v63, %v775_v5  ;;  %v724_v11 = vmul.f32 %v3106_v9, %v4461_v41  ;;  %v665_v12 = vpop.f32.mrb[5].mxu0  ;;  %944 = vst.msk [vmem:[#allocation2 + $0x128] sm:$0xff] %vm521_vm0, %v941_v6  ;;  %v937_v13 = vmul.f32 0.1, %v933_v0 }
 0x1d3   : > { %808 = vst.msk [vmem:[#allocation2 + $0x50] sm:$0xff] %vm521_vm0, %v791_v10  ;;  %v789_v14 = vsel %vm757_vm7, %v741_v2, %v773_v8  ;;  %v722_v15 = vmul.f32 %v4461_v41, %v665_v12  ;;  %v3107_v16 = vpop.f32.mrb[6].mxu0 }
 0x1d4   : > { %806 = vst.msk [vmem:[#allocation2 + $0x30] sm:$0xff] %vm521_vm0, %v789_v14  ;;  %v746_v17 = vadd.f32 %v4466_v43, %v724_v11  ;;  %v725_v18 = vmul.f32 %v3107_v16, %v4461_v41  ;;  %v668_v19 = vpop.f32.mrb[7].mxu0  ;;  %v939_v20 = vsel %vm935_vm8, %v933_v0, %v937_v13  ;;  %v4516_v0 = vld [vmem:[#allocation9 + $0x60] sm:$0xff]  }
 0x1d5   : > { %v744_v21 = vadd.f32 %v4466_v43, %v722_v15  ;;  %v723_v22 = vmul.f32 %v4461_v41, %v668_v19  ;;  %v942_v23 = vmul.f32 %v940_v58, %v939_v20 }
 0x1d6   : > { %vm762_vm9 = vcmp.gt.f32.partialorder %v746_v17, 0.0  ;;  %v778_v24 = vmul.f32 0.1, %v746_v17  ;;  %v747_v25 = vadd.f32 %v4466_v43, %v725_v18 }
 0x1d7   : > { %vm760_vm10 = vcmp.gt.f32.partialorder %v744_v21, 0.0  ;;  %v776_v26 = vmul.f32 0.1, %v744_v21  ;;  %v745_v27 = vadd.f32 %v4466_v43, %v723_v22  ;;  %945 = vst.msk [vmem:[#allocation2 + $0x130] sm:$0xff] %vm521_vm0, %v942_v23 }
 0x1d8   : > { %v794_v28 = vsel %vm762_vm9, %v746_v17, %v778_v24  ;;  %vm763_vm11 = vcmp.gt.f32.partialorder %v747_v25, 0.0  ;;  %v779_v29 = vmul.f32 0.1, %v747_v25  ;;  %v1627_v50 = vld [vmem:[#allocation2 + $0x48] sm:$0xff] }
 0x1d9   : > { %811 = vst.msk [vmem:[#allocation2 + $0x88] sm:$0xff] %vm521_vm0, %v794_v28  ;;  %v792_v30 = vsel %vm760_vm10, %v744_v21, %v776_v26  ;;  %vm761_vm12 = vcmp.gt.f32.partialorder %v745_v27, 0.0  ;;  %v777_v31 = vmul.f32 0.1, %v745_v27  ;;  %v3110_v32 = vpop.f32.mrb[8].mxu0  ;;  %v1625_v44 = vld [vmem:[#allocation2 + $0x28] sm:$0xff] }
 0x1da   : > { %809 = vst.msk [vmem:[#allocation2 + $0x68] sm:$0xff] %vm521_vm0, %v792_v30  ;;  %v795_v33 = vsel %vm763_vm11, %v747_v25, %v779_v29  ;;  %v728_v34 = vmul.f32 %v3110_v32, %v4461_v41  ;;  %v681_v35 = vpop.f32.mrb[9].mxu0  ;;  %v1628_v36 = vld [vmem:[#allocation2 + $0x50] sm:$0xff] }
 0x1db   : > { %812 = vst.msk [vmem:[#allocation2 + $0x90] sm:$0xff] %vm521_vm0, %v795_v33  ;;  %v793_v38 = vsel %vm761_vm12, %v745_v27, %v777_v31  ;;  %v726_v39 = vmul.f32 %v4461_v41, %v681_v35  ;;  %v3111_v42 = vpop.f32.mrb[10].mxu0  ;;  %v1626_v45 = vld [vmem:[#allocation2 + $0x30] sm:$0xff]  ;;  %v4506_v53 = vpack.c.bf16 %v1628_v36, %v1627_v50 }
 0x1dc   : > { %810 = vst.msk [vmem:[#allocation2 + $0x70] sm:$0xff] %vm521_vm0, %v793_v38  ;;  %v750_v46 = vadd.f32 %v4466_v43, %v728_v34  ;;  %v729_v47 = vmul.f32 %v3111_v42, %v4461_v41  ;;  %v684_v48 = vpop.f32.mrb[11].mxu0  ;;  %v4502_v49 = vpack.c.bf16 %v1626_v45, %v1625_v44  ;;  %v878_v45 = vstv %s507_s5  ;;  %s3749_s5 = scalar_lea.vmem %s3748_s7, 4096 }
 0x1dd   : > { %v748_v51 = vadd.f32 %v4466_v43, %v726_v39  ;;  %v727_v52 = vmul.f32 %v4461_v41, %v684_v48  ;;  %p3751_p2 = scmp.lt.s32.totalorder %s3749_s5, %s3743_s11 }
 0x1de   : > { %vm766_vm13 = vcmp.gt.f32.partialorder %v750_v46, 0.0  ;;  %v782_v55 = vmul.f32 0.1, %v750_v46  ;;  %v751_v56 = vadd.f32 %v4466_v43, %v729_v47  ;;  %3224 = vmatprep.mubr.msk.bf16.mxu1 %vm521_vm0, %v4502_v49 }
 0x1df   : > { %vm764_vm14 = vcmp.gt.f32.partialorder %v748_v51, 0.0  ;;  %v780_v57 = vmul.f32 0.1, %v748_v51  ;;  %v749_v58 = vadd.f32 %v4466_v43, %v727_v52  ;;  %3225 = vmatmul.mubr.msk.bf16.vlgmr.msra.gmra.mrb[4].mxu1 %vm521_vm0, %v4506_v53  ;;  %v1803_v52 = vld [vmem:[#allocation2 + $0x29] sm:$0xff]  ;;  %p3752_p3 = por %p3751_p2, %p3750_p6 }
 0x1e0   : > { %v798_v59 = vsel %vm766_vm13, %v750_v46, %v782_v55  ;;  %vm767_vm15 = vcmp.gt.f32.partialorder %v751_v56, 0.0  ;;  %v783_v60 = vmul.f32 0.1, %v751_v56  ;;  %3241 = vmatpush3.bf16.msra.mxu1 %v4451_v37  ;;  %v1631_v13 = vld [vmem:[#allocation2 + $0x88] sm:$0xff] }
 0x1e1   : > { %815 = vst.msk [vmem:[#allocation2 + $0xc8] sm:$0xff] %vm521_vm0, %v798_v59  ;;  %v796_v61 = vsel %vm764_vm14, %v748_v51, %v780_v57  ;;  %vm765_vm1 = vcmp.gt.f32.partialorder %v749_v58, 0.0  ;;  %v781_v62 = vmul.f32 0.1, %v749_v58  ;;  %v3114_v63 = vpop.f32.mrb[12].mxu0  ;;  %3242 = vmatprep.subr.bf16.mxu1 %v3610_v54  ;;  %v1629_v7 = vld [vmem:[#allocation2 + $0x68] sm:$0xff]  ;;  %p3753_p0 = pnand %p3752_p3, %p3746_p11 }
 0x1e2   : > { %813 = vst.msk [vmem:[#allocation2 + $0xa8] sm:$0xff] %vm521_vm0, %v796_v61  ;;  %v799_v1 = vsel %vm767_vm15, %v751_v56, %v783_v60  ;;  %v732_v2 = vmul.f32 %v3114_v63, %v4461_v41  ;;  %v697_v3 = vpop.f32.mrb[13].mxu0  ;;  %v1632_v4 = vld [vmem:[#allocation2 + $0x90] sm:$0xff] }
 0x1e3   : > { %816 = vst.msk [vmem:[#allocation2 + $0xd0] sm:$0xff] %vm521_vm0, %v799_v1  ;;  %v797_v37 = vsel %vm765_vm1, %v749_v58, %v781_v62  ;;  %v730_v5 = vmul.f32 %v4461_v41, %v697_v3  ;;  %v3115_v6 = vpop.f32.mrb[14].mxu0  ;;  %v1630_v8 = vld [vmem:[#allocation2 + $0x70] sm:$0xff]  ;;  %v4530_v16 = vpack.c.bf16 %v1632_v4, %v1631_v13 }
 0x1e4   : > { %814 = vst.msk [vmem:[#allocation2 + $0xb0] sm:$0xff] %vm521_vm0, %v797_v37  ;;  %v754_v9 = vadd.f32 %v4466_v43, %v732_v2  ;;  %v733_v10 = vmul.f32 %v3115_v6, %v4461_v41  ;;  %v700_v11 = vpop.f32.mrb[15].mxu0  ;;  %v4526_v12 = vpack.c.bf16 %v1630_v8, %v1629_v7  ;;  %3243 = vmatpush3.bf16.msra.mxu1 %v3610_v54  ;;  %v1804_v57 = vld [vmem:[#allocation2 + $0x31] sm:$0xff]  ;;  %v1805_v61 = vld [vmem:[#allocation2 + $0x49] sm:$0xff] }
 0x1e5   : > { %v752_v14 = vadd.f32 %v4466_v43, %v730_v5  ;;  %v731_v15 = vmul.f32 %v4461_v41, %v700_v11  ;;  %3260 = vmatprep.subr.bf16.mxu1 %v4516_v0  ;;  %v4568_v60 = vpack.c.bf16 %v1804_v57, %v1803_v52  ;;  %v1806_v62 = vld [vmem:[#allocation2 + $0x51] sm:$0xff]  ;;  %v1807_v63 = vld [vmem:[#allocation2 + $0x69] sm:$0xff] }
 0x1e6   : > { %vm770_vm3 = vcmp.gt.f32.partialorder %v754_v9, 0.0  ;;  %v786_v17 = vmul.f32 0.1, %v754_v9  ;;  %v755_v18 = vadd.f32 %v4466_v43, %v733_v10  ;;  %3228 = vmatprep.mubr.msk.bf16.mxu1 %vm521_vm0, %v4526_v12  ;;  %v1808_v1 = vld [vmem:[#allocation2 + $0x71] sm:$0xff]  ;;  %v4574_v37 = vpack.c.bf16 %v1806_v62, %v1805_v61  ;;  %v3615_v6 = vld [vmem:[#allocation9 + $0x8] sm:$0xff]   ;;  %v3617_v10 = vld [vmem:[#allocation9 + $0x20] sm:$0xff]  }
 0x1e7   : > { %vm768_vm4 = vcmp.gt.f32.partialorder %v752_v14, 0.0  ;;  %v784_v19 = vmul.f32 0.1, %v752_v14  ;;  %v753_v20 = vadd.f32 %v4466_v43, %v731_v15  ;;  %3229 = vmatmul.mubr.msk.bf16.gmra.mrb[8].mxu1 %vm521_vm0, %v4530_v16  ;;  %v4576_v5 = vpack.c.bf16 %v1808_v1, %v1807_v63  ;;  %v3616_v7 = vld [vmem:[#allocation9 + $0x68] sm:$0xff]  }
 0x1e8   : > { %v802_v21 = vsel %vm770_vm3, %v754_v9, %v786_v17  ;;  %vm771_vm5 = vcmp.gt.f32.partialorder %v755_v18, 0.0  ;;  %v787_v22 = vmul.f32 0.1, %v755_v18  ;;  %v1635_v39 = vld [vmem:[#allocation2 + $0xc8] sm:$0xff]  ;;  %v1810_v9 = vld [vmem:[#allocation2 + $0x91] sm:$0xff] }
 0x1e9   : > { %819 = vst.msk [vmem:[#allocation2 + $0x108] sm:$0xff] %vm521_vm0, %v802_v21  ;;  %v800_v23 = vsel %vm768_vm4, %v752_v14, %v784_v19  ;;  %vm769_vm6 = vcmp.gt.f32.partialorder %v753_v20, 0.0  ;;  %v785_v24 = vmul.f32 0.1, %v753_v20  ;;  %v861_v25 = vpop.f32.mrb[16].mxu0  ;;  %v1633_v32 = vld [vmem:[#allocation2 + $0xa8] sm:$0xff] }
 0x1ea   : > { %817 = vst.msk [vmem:[#allocation2 + $0xe8] sm:$0xff] %vm521_vm0, %v800_v23  ;;  %v803_v26 = vsel %vm771_vm5, %v755_v18, %v787_v22  ;;  %v868_v27 = vmul.f32 %v4461_v41, %v861_v25  ;;  %v3126_v28 = vpop.f32.mrb[17].mxu0  ;;  %v1636_v29 = vld [vmem:[#allocation2 + $0xd0] sm:$0xff]  ;;  %v1996_v1 = vld [vmem:[#allocation2 + $0x127] sm:$0xff] }
 0x1eb   : > { %820 = vst.msk [vmem:[#allocation2 + $0x110] sm:$0xff] %vm521_vm0, %v803_v26  ;;  %v801_v30 = vsel %vm769_vm6, %v753_v20, %v785_v24  ;;  %v864_v31 = vpop.f32.mrb[18].mxu0  ;;  %v1634_v33 = vld [vmem:[#allocation2 + $0xb0] sm:$0xff]  ;;  %v4553_v42 = vpack.c.bf16 %v1636_v29, %v1635_v39  ;;  %v1982_v26 = vld [vmem:[#allocation2 + $0x47] sm:$0xff] }
 0x1ec   : > { %818 = vst.msk [vmem:[#allocation2 + $0xf0] sm:$0xff] %vm521_vm0, %v801_v30  ;;  %v870_v34 = vadd.f32 %v4466_v43, %v868_v27  ;;  %v869_v35 = vmul.f32 %v4461_v41, %v864_v31  ;;  %v3127_v36 = vpop.f32.mrb[19].mxu0  ;;  %v4551_v38 = vpack.c.bf16 %v1634_v33, %v1633_v32  ;;  %v1809_v8 = vld [vmem:[#allocation2 + $0x89] sm:$0xff]  ;;  %v1812_v13 = vld [vmem:[#allocation2 + $0xb1] sm:$0xff] }
 0x1ed   : > { %v1811_v11 = vld [vmem:[#allocation2 + $0xa9] sm:$0xff]  ;;  %v4589_v15 = vpack.c.bf16 %v1810_v9, %v1809_v8  ;;  %v3623_v8 = vld [vmem:[#allocation9 + $0x38] sm:$0xff]  }
 0x1ee   : > { %vm872_vm7 = vcmp.gt.f32.partialorder %v870_v34, 0.0  ;;  %v874_v44 = vmul.f32 0.1, %v870_v34  ;;  %v871_v46 = vadd.f32 %v4466_v43, %v869_v35  ;;  %3232 = vmatprep.mubr.msk.bf16.mxu1 %vm521_vm0, %v4551_v38  ;;  %v3618_v14 = vld [vmem:[#allocation9 + $0x70] sm:$0xff]   ;;  %v1984_v33 = vld [vmem:[#allocation2 + $0x67] sm:$0xff] }
 0x1ef   : > { %3233 = vmatmul.mubr.msk.bf16.gmra.mrb[12].mxu1 %vm521_vm0, %v4553_v42  ;;  %v1983_v23 = vld [vmem:[#allocation2 + $0x4f] sm:$0xff]  ;;  %v948_v35 = vld [vmem:[#allocation2 + $0x27] sm:$0xff] }
 0x1f0   : > { %v876_v47 = vsel %vm872_vm7, %v870_v34, %v874_v44  ;;  %vm873_vm8 = vcmp.gt.f32.partialorder %v871_v46, 0.0  ;;  %v875_v41 = vmul.f32 0.1, %v871_v46  ;;  %v1639_v58 = vld [vmem:[#allocation2 + $0x108] sm:$0xff]  ;;  %v4615_v27 = vpack.c.bf16 %v1983_v23, %v1982_v26  ;;  %v2612_v26 = vld [vmem:[%s4326_s0 + $0x10] sm:$0xff] }
 0x1f1   : > { %v879_v48 = vmul.f32 %v878_v45, %v876_v47  ;;  %v1637_v55 = vld [vmem:[#allocation2 + $0xe8] sm:$0xff] }
 0x1f2   : > { %v877_v50 = vsel %vm873_vm8, %v871_v46, %v875_v41  ;;  %v1640_v51 = vld [vmem:[#allocation2 + $0x110] sm:$0xff]  ;;  %v1986_v36 = vld [vmem:[#allocation2 + $0x87] sm:$0xff]  ;;  %v3620_v46 = vld [vmem:[#allocation9 + $0x78] sm:$0xff]  }
 0x1f3   : > { %881 = vst.msk [vmem:[#allocation2 + $0x8] sm:$0xff] %vm521_vm0, %v879_v48  ;;  %v880_v54 = vmul.f32 %v878_v45, %v877_v50  ;;  %v1638_v56 = vld [vmem:[#allocation2 + $0xf0] sm:$0xff]  ;;  %v4564_v59 = vpack.c.bf16 %v1640_v51, %v1639_v58  ;;  %v3619_v45 = vld [vmem:[#allocation9 + $0x28] sm:$0xff]   ;;  %v3622_v50 = vld [vmem:[#allocation9 + $0x80] sm:$0xff]  }
 0x1f4   : > { %v4561_v43 = vpack.c.bf16 %v1638_v56, %v1637_v55  ;;  %v1815_v17 = vld [vmem:[#allocation2 + $0xe9] sm:$0xff]  ;;  %v1816_v18 = vld [vmem:[#allocation2 + $0xf1] sm:$0xff] }
 0x1f5   : > { %882 = vst.msk [vmem:[#allocation2 + $0x10] sm:$0xff] %vm521_vm0, %v880_v54  ;;  %v4603_v20 = vpack.c.bf16 %v1816_v18, %v1815_v17  ;;  %v1817_v21 = vld [vmem:[#allocation2 + $0x109] sm:$0xff]  ;;  %v1818_v22 = vld [vmem:[#allocation2 + $0x111] sm:$0xff] }
 0x1f6   : > { %3236 = vmatprep.mubr.msk.bf16.mxu1 %vm521_vm0, %v4561_v43  ;;  %v4613_v25 = vpack.c.bf16 %v1818_v22, %v1817_v21  ;;  %v1985_v30 = vld [vmem:[#allocation2 + $0x6f] sm:$0xff]  ;;  %v1988_v51 = vld [vmem:[#allocation2 + $0xa7] sm:$0xff] }
 0x1f7   : > { %3237 = vmatmul.mubr.msk.bf16.gmra.mrb[16].mxu1 %vm521_vm0, %v4564_v59  ;;  %v949_v31 = vld [vmem:[#allocation2 + $0x2f] sm:$0xff]  ;;  %v4624_v34 = vpack.c.bf16 %v1985_v30, %v1984_v33  ;;  %v1990_v54 = vld [vmem:[#allocation2 + $0xc7] sm:$0xff] }
 0x1f8   : > { %3244 = vmatprep.mubr.msk.bf16.mxu1 %vm521_vm0, %v4568_v60  ;;  %v1987_v32 = vld [vmem:[#allocation2 + $0x8f] sm:$0xff]  ;;  %v4626_v39 = vpack.c.bf16 %v949_v31, %v948_v35  ;;  %v1992_v58 = vld [vmem:[#allocation2 + $0xe7] sm:$0xff] }
 0x1f9   : > { %v4628_v44 = vpack.c.bf16 %v1987_v32, %v1986_v36  ;;  %v1989_v47 = vld [vmem:[#allocation2 + $0xaf] sm:$0xff]  ;;  %v1994_v62 = vld [vmem:[#allocation2 + $0x107] sm:$0xff]  ;;  %v2613_v36 = vld [vmem:[%s4326_s0 + $0x18] sm:$0xff] }
 0x1fa   : > { %v974_v2 = vld [vmem:[#allocation2 + $0x8] sm:$0xff]  ;;  %v3621_v41 = vld [vmem:[#allocation9 + $0x30] sm:$0xff]   ;;  %v4638_v52 = vpack.c.bf16 %v1989_v47, %v1988_v51  ;;  %v2610_v30 = vld [vmem:[%s4326_s0] sm:$0xff] }
 0x1fb   : > { %v946_v28 = vld [vmem:[#allocation2 + $0x7] sm:$0xff]  ;;  %v1991_v48 = vld [vmem:[#allocation2 + $0xcf] sm:$0xff] }
 0x1fc   : > { %v975_v3 = vld [vmem:[#allocation2 + $0x10] sm:$0xff]  ;;  %v4640_v55 = vpack.c.bf16 %v1991_v48, %v1990_v54  ;;  %v3624_v9 = vld [vmem:[#allocation9 + $0x88] sm:$0xff]  }
 0x1fd   : > { %v990_v4 = vpack.c.bf16 %v975_v3, %v974_v2  ;;  %v947_v24 = vld [vmem:[#allocation2 + $0xf] sm:$0xff] }
 0x1fe   : > { %v962_v29 = vpack.c.bf16 %v947_v24, %v946_v28  ;;  %v1993_v56 = vld [vmem:[#allocation2 + $0xef] sm:$0xff] }
 0x1ff   : > { %3144 = vmatprep.mubr.msk.bf16.mxu0 %vm521_vm0, %v990_v4  ;;  %3245 = vmatmul.mubr.msk.bf16.vlgmr.msra.gmra.mrb[4].mxu1 %vm521_vm0, %v4574_v37  ;;  %v1995_v57 = vld [vmem:[#allocation2 + $0x10f] sm:$0xff]  ;;  %v2003_v61 = vpack.c.bf16 %v1993_v56, %v1992_v58 }
 0x200   : > { %3145 = vmatmul.mubr.msk.bf16.vlgmr.msra.gmra.mrb[20].mxu0 %vm521_vm0, %v4502_v49  ;;  %3248 = vmatprep.mubr.msk.bf16.mxu1 %vm521_vm0, %v4576_v5  ;;  %v4591_v49 = vpack.c.bf16 %v1812_v13, %v1811_v11  ;;  %v2004_v63 = vpack.c.bf16 %v1995_v57, %v1994_v62  ;;  %v1997_v2 = vld [vmem:[#allocation2 + $0x12f] sm:$0xff] }
 0x201   : > { %3148 = vmatprep.mubr.msk.bf16.mxu0 %vm521_vm0, %v4506_v53  ;;  %3161 = vmatpush3.bf16.msra.mxu0 %v4454_v40  ;;  %v1813_v40 = vld [vmem:[#allocation2 + $0xc9] sm:$0xff]  ;;  %v1270_v4 = vld [vmem:[#allocation2 + $0x11] sm:$0xff] }
 0x202   : > { %3261 = vmatpush3.bf16.msra.mxu1 %v4516_v0  ;;  %3162 = vmatprep.subr.bf16.mxu0 %v3615_v6  ;;  %v1814_v0 = vld [vmem:[#allocation2 + $0xd1] sm:$0xff]  ;;  %v1269_v3 = vld [vmem:[#allocation2 + $0x9] sm:$0xff] }
 0x203   : > { %3262 = vmatprep.subr.bf16.mxu1 %v3616_v7  ;;  %v4601_v19 = vpack.c.bf16 %v1814_v0, %v1813_v40  ;;  %v2611_v48 = vld [vmem:[%s4326_s0 + $0x8] sm:$0xff] }
 0x205   : > { %3163 = vmatpush3.bf16.msra.mxu0 %v3615_v6  ;;  %v2005_v6 = vpack.c.bf16 %v1997_v2, %v1996_v1 }
 0x206   : > { %3263 = vmatpush3.bf16.msra.mxu1 %v3616_v7  ;;  %3180 = vmatprep.subr.bf16.mxu0 %v3617_v10  ;;  %v1285_v7 = vpack.c.bf16 %v1270_v4, %v1269_v3 }
 0x207   : > { %3249 = vmatmul.mubr.msk.bf16.gmra.mrb[8].mxu1 %vm521_vm0, %v4589_v15  ;;  %3280 = vmatprep.subr.bf16.mxu1 %v3618_v14 }
 0x208   : > { %3149 = vmatmul.mubr.msk.bf16.gmra.mrb[24].mxu0 %vm521_vm0, %v4526_v12  ;;  %3252 = vmatprep.mubr.msk.bf16.mxu1 %vm521_vm0, %v4591_v49 }
 0x209   : > { %3152 = vmatprep.mubr.msk.bf16.mxu0 %vm521_vm0, %v4530_v16 }
 0x20f   : > { %3253 = vmatmul.mubr.msk.bf16.gmra.mrb[12].mxu1 %vm521_vm0, %v4601_v19 }
 0x210   : > { %3153 = vmatmul.mubr.msk.bf16.gmra.mrb[28].mxu0 %vm521_vm0, %v4551_v38  ;;  %3256 = vmatprep.mubr.msk.bf16.mxu1 %vm521_vm0, %v4603_v20 }
 0x211   : > { %3156 = vmatprep.mubr.msk.bf16.mxu0 %vm521_vm0, %v4553_v42 }
 0x217   : > { %3257 = vmatmul.mubr.msk.bf16.gmra.mrb[16].mxu1 %vm521_vm0, %v4613_v25 }
 0x218   : > { %3157 = vmatmul.mubr.msk.bf16.gmra.mrb[32].mxu0 %vm521_vm0, %v4561_v43  ;;  %3264 = vmatprep.mubr.msk.bf16.mxu1 %vm521_vm0, %v4615_v27 }
 0x219   : > { %3164 = vmatprep.mubr.msk.bf16.mxu0 %vm521_vm0, %v962_v29 }
 0x21f   : > { %3265 = vmatmul.mubr.msk.bf16.vlgmr.msra.gmra.mrb[4].mxu1 %vm521_vm0, %v4624_v34 }
 0x220   : > { %3165 = vmatmul.mubr.msk.bf16.vlgmr.msra.gmra.mrb[20].mxu0 %vm521_vm0, %v4626_v39  ;;  %3268 = vmatprep.mubr.msk.bf16.mxu1 %vm521_vm0, %v4628_v44 }
 0x221   : > { %3168 = vmatprep.mubr.msk.bf16.mxu0 %vm521_vm0, %v4615_v27  ;;  %3181 = vmatpush3.bf16.msra.mxu0 %v3617_v10 }
 0x222   : > { %3281 = vmatpush3.bf16.msra.mxu1 %v3618_v14  ;;  %3182 = vmatprep.subr.bf16.mxu0 %v3619_v45  ;;  %v4725_v14 = vld [vmem:[%s5006_s20] ss:$0 sm:$0xff] }
 0x223   : > { %3282 = vmatprep.subr.bf16.mxu1 %v3620_v46 }
 0x225   : > { %3183 = vmatpush3.bf16.msra.mxu0 %v3619_v45 }
 0x226   : > { %3283 = vmatpush3.bf16.msra.mxu1 %v3620_v46  ;;  %3200 = vmatprep.subr.bf16.mxu0 %v3621_v41 }
 0x227   : > { %3269 = vmatmul.mubr.msk.bf16.gmra.mrb[8].mxu1 %vm521_vm0, %v4638_v52  ;;  %3300 = vmatprep.subr.bf16.mxu1 %v3622_v50 }
 0x228   : > { %3169 = vmatmul.mubr.msk.bf16.gmra.mrb[24].mxu0 %vm521_vm0, %v4624_v34  ;;  %3272 = vmatprep.mubr.msk.bf16.mxu1 %vm521_vm0, %v4640_v55 }
 0x229   : > { %3172 = vmatprep.mubr.msk.bf16.mxu0 %vm521_vm0, %v4628_v44 }
 0x22f   : > { %3273 = vmatmul.mubr.msk.bf16.gmra.mrb[12].mxu1 %vm521_vm0, %v2003_v61 }
 0x230   : > { %3173 = vmatmul.mubr.msk.bf16.gmra.mrb[28].mxu0 %vm521_vm0, %v4638_v52  ;;  %3276 = vmatprep.mubr.msk.bf16.mxu1 %vm521_vm0, %v2004_v63 }
 0x231   : > { %3176 = vmatprep.mubr.msk.bf16.mxu0 %vm521_vm0, %v4640_v55 }
 0x237   : > { %3277 = vmatmul.mubr.msk.bf16.gmra.mrb[16].mxu1 %vm521_vm0, %v2005_v6 }
 0x238   : > { %3177 = vmatmul.mubr.msk.bf16.gmra.mrb[32].mxu0 %vm521_vm0, %v2003_v61  ;;  %3284 = vmatprep.mubr.msk.bf16.mxu1 %vm521_vm0, %v4506_v53  ;;  %v2174_v53 = vld [vmem:[#allocation2 + $0x128] sm:$0xff] }
 0x239   : > { %3184 = vmatprep.mubr.msk.bf16.mxu0 %vm521_vm0, %v1285_v7 }
 0x23f   : > { %3285 = vmatmul.mubr.msk.bf16.vlgmr.msra.gmra.mrb[4].mxu1 %vm521_vm0, %v4526_v12  ;;  %v2175_v12 = vld [vmem:[#allocation2 + $0x130] sm:$0xff] }
 0x240   : > { %3185 = vmatmul.mubr.msk.bf16.vlgmr.msra.gmra.mrb[20].mxu0 %vm521_vm0, %v4568_v60  ;;  %3288 = vmatprep.mubr.msk.bf16.mxu1 %vm521_vm0, %v4530_v16  ;;  %v2183_v16 = vpack.c.bf16 %v2175_v12, %v2174_v53  ;;  %v2614_v12 = vld [vmem:[%s4326_s0 + $0x20] sm:$0xff] }
 0x241   : > { %3188 = vmatprep.mubr.msk.bf16.mxu0 %vm521_vm0, %v4574_v37  ;;  %3201 = vmatpush3.bf16.msra.mxu0 %v3621_v41 }
 0x242   : > { %3301 = vmatpush3.bf16.msra.mxu1 %v3622_v50  ;;  %3202 = vmatprep.subr.bf16.mxu0 %v3623_v8 }
 0x243   : > { %3302 = vmatprep.subr.bf16.mxu1 %v3624_v9 }
 0x245   : > { %3203 = vmatpush3.bf16.msra.mxu0 %v3623_v8  ;;  %v2616_v8 = vld [vmem:[%s4326_s0 + $0x30] sm:$0xff] }
 0x246   : > { %3303 = vmatpush3.bf16.msra.mxu1 %v3624_v9 }
 0x247   : > { %3289 = vmatmul.mubr.msk.bf16.gmra.mrb[8].mxu1 %vm521_vm0, %v4551_v38  ;;  %v2352_v38 = vld [vmem:[#allocation2 + $0x129] sm:$0xff] }
 0x248   : > { %3189 = vmatmul.mubr.msk.bf16.gmra.mrb[24].mxu0 %vm521_vm0, %v4576_v5  ;;  %3292 = vmatprep.mubr.msk.bf16.mxu1 %vm521_vm0, %v4553_v42  ;;  %v2353_v42 = vld [vmem:[#allocation2 + $0x131] sm:$0xff] }
 0x249   : > { %3192 = vmatprep.mubr.msk.bf16.mxu0 %vm521_vm0, %v4589_v15 }
 0x24f   : > { %3293 = vmatmul.mubr.msk.bf16.gmra.mrb[12].mxu1 %vm521_vm0, %v4561_v43  ;;  %v2361_v43 = vpack.c.bf16 %v2353_v42, %v2352_v38 }
 0x250   : > { %3193 = vmatmul.mubr.msk.bf16.gmra.mrb[28].mxu0 %vm521_vm0, %v4591_v49  ;;  %3296 = vmatprep.mubr.msk.bf16.mxu1 %vm521_vm0, %v4564_v59 }
 0x251   : > { %3196 = vmatprep.mubr.msk.bf16.mxu0 %vm521_vm0, %v4601_v19 }
 0x257   : > { %3297 = vmatmul.mubr.msk.bf16.gmra.mrb[16].mxu1 %vm521_vm0, %v2183_v16 }
 0x258   : > { %3197 = vmatmul.mubr.msk.bf16.gmra.mrb[32].mxu0 %vm521_vm0, %v4603_v20  ;;  %3304 = vmatprep.mubr.msk.bf16.mxu1 %vm521_vm0, %v4574_v37  ;;  %v4720_v37 = vld [vmem:[%s5005_s19] ss:$0 sm:$0xff] }
 0x259   : > { %3204 = vmatprep.mubr.msk.bf16.mxu0 %vm521_vm0, %v4626_v39 }
 0x25f   : > { %3305 = vmatmul.mubr.msk.bf16.vlgmr.msra.gmra.mrb[4].mxu1 %vm521_vm0, %v4576_v5 }
 0x260   : > { %3205 = vmatmul.mubr.msk.bf16.vlgmr.msra.gmra.mrb[20].mxu0 %vm521_vm0, %v4615_v27  ;;  %3308 = vmatprep.mubr.msk.bf16.mxu1 %vm521_vm0, %v4589_v15 }
 0x261   : > { %3208 = vmatprep.mubr.msk.bf16.mxu0 %vm521_vm0, %v4624_v34 }
 0x267   : > { %3309 = vmatmul.mubr.msk.bf16.gmra.mrb[8].mxu1 %vm521_vm0, %v4591_v49 }
 0x268   : > { %3209 = vmatmul.mubr.msk.bf16.gmra.mrb[24].mxu0 %vm521_vm0, %v4628_v44  ;;  %3312 = vmatprep.mubr.msk.bf16.mxu1 %vm521_vm0, %v4601_v19 }
 0x269   : > { %3212 = vmatprep.mubr.msk.bf16.mxu0 %vm521_vm0, %v4638_v52 }
 0x26f   : > { %3313 = vmatmul.mubr.msk.bf16.gmra.mrb[12].mxu1 %vm521_vm0, %v4603_v20 }
 0x270   : > { %3213 = vmatmul.mubr.msk.bf16.gmra.mrb[28].mxu0 %vm521_vm0, %v4640_v55  ;;  %3316 = vmatprep.mubr.msk.bf16.mxu1 %vm521_vm0, %v4613_v25 }
 0x271   : > { %3216 = vmatprep.mubr.msk.bf16.mxu0 %vm521_vm0, %v2003_v61 }
 0x277   : > { %3317 = vmatmul.mubr.msk.bf16.gmra.mrb[16].mxu1 %vm521_vm0, %v2361_v43 }
 0x278   : > { %3217 = vmatmul.mubr.msk.bf16.gmra.mrb[32].mxu0 %vm521_vm0, %v2004_v63 }
 0x332   : > { %v3306_v59 = vpop.f32.mrb[4].mxu1 }
 0x333   : > { %v3206_v60 = vpop.f32.mrb[20].mxu0  ;;  %v2437_v5 = vpop.f32.mrb[5].mxu1 }
 0x334   : > { %v3320_v10 = vadd.f32 %v3306_v59, %v3206_v60  ;;  %v1546_v11 = vpop.f32.mrb[21].mxu0  ;;  %v3307_v13 = vpop.f32.mrb[6].mxu1 }
 0x335   : > { %v3321_v15 = vadd.f32 %v2437_v5, %v1546_v11  ;;  %v3207_v49 = vpop.f32.mrb[22].mxu0  ;;  %v2440_v40 = vpop.f32.mrb[7].mxu1  ;;  %v2617_v5 = vld [vmem:[%s4326_s0 + $0x38] sm:$0xff] }
 0x336   : > { %v2525_v0 = vmul.f32 %v3320_v10, %v4720_v37  ;;  %v3322_v17 = vadd.f32 %v3307_v13, %v3207_v49  ;;  %v1549_v18 = vpop.f32.mrb[23].mxu0 }
 0x337   : > { %v2523_v19 = vmul.f32 %v3321_v15, %v4720_v37  ;;  %v3323_v20 = vadd.f32 %v2440_v40, %v1549_v18 }
 0x338   : > { %v2548_v21 = vadd.f32 %v4725_v14, %v2525_v0  ;;  %v2526_v22 = vmul.f32 %v3322_v17, %v4720_v37 }
 0x339   : > { %v2546_v23 = vadd.f32 %v4725_v14, %v2523_v19  ;;  %v2524_v24 = vmul.f32 %v3323_v20, %v4720_v37  ;;  %v2615_v19 = vld [vmem:[%s4326_s0 + $0x28] sm:$0xff] }
 0x33a   : > { %vm2564_vm0 = vcmp.gt.f32.partialorder %v2548_v21, 0.0  ;;  %v2580_v25 = vmul.f32 0.1, %v2548_v21  ;;  %v2549_v27 = vadd.f32 %v4725_v14, %v2526_v22  ;;  %v3310_v28 = vpop.f32.mrb[8].mxu1 }
 0x33b   : > { %vm2562_vm9 = vcmp.gt.f32.partialorder %v2546_v23, 0.0  ;;  %v2578_v29 = vmul.f32 0.1, %v2546_v23  ;;  %v2547_v31 = vadd.f32 %v4725_v14, %v2524_v24  ;;  %v3210_v32 = vpop.f32.mrb[24].mxu0  ;;  %v2453_v33 = vpop.f32.mrb[9].mxu1 }
 0x33c   : > { %v2596_v34 = vsel %vm2564_vm0, %v2548_v21, %v2580_v25  ;;  %vm2565_vm10 = vcmp.gt.f32.partialorder %v2549_v27, 0.0  ;;  %v2581_v35 = vmul.f32 0.1, %v2549_v27  ;;  %v3324_v39 = vadd.f32 %v3310_v28, %v3210_v32  ;;  %v1562_v44 = vpop.f32.mrb[25].mxu0  ;;  %v3311_v45 = vpop.f32.mrb[10].mxu1 }
 0x33d   : > { %v2628_v46 = vadd.f32 %v2612_v26, %v2596_v34  ;;  %v2594_v47 = vsel %vm2562_vm9, %v2546_v23, %v2578_v29  ;;  %vm2563_vm11 = vcmp.gt.f32.partialorder %v2547_v31, 0.0  ;;  %v2579_v41 = vmul.f32 0.1, %v2547_v31  ;;  %v3211_v50 = vpop.f32.mrb[26].mxu0  ;;  %v2456_v51 = vpop.f32.mrb[11].mxu1 }
 0x33e   : > { %v2626_v52 = vadd.f32 %v2610_v30, %v2594_v47  ;;  %v2597_v54 = vsel %vm2565_vm10, %v2549_v27, %v2581_v35  ;;  %v2529_v55 = vmul.f32 %v3324_v39, %v4720_v37  ;;  %v3325_v56 = vadd.f32 %v2453_v33, %v1562_v44  ;;  %v1565_v57 = vpop.f32.mrb[27].mxu0  ;;  %v2620_v35 = vld [vmem:[%s4326_s0 + $0x50] sm:$0xff]  ;;  %v2618_v44 = vld [vmem:[%s4326_s0 + $0x40] sm:$0xff] }
 0x33f   : > { %2644 = vst.msk [vmem:[%s4742_s21 + $0x10] sm:$0xff] %vm590_vm2, %v2628_v46  ;;  %v2629_v58 = vadd.f32 %v2613_v36, %v2597_v54  ;;  %v2595_v61 = vsel %vm2563_vm11, %v2547_v31, %v2579_v41  ;;  %v3326_v62 = vadd.f32 %v3311_v45, %v3211_v50  ;;  %v3327_v63 = vadd.f32 %v2456_v51, %v1565_v57  ;;  %v2621_v51 = vld [vmem:[%s4326_s0 + $0x58] sm:$0xff] }
 0x340   : > { %2642 = vst.msk [vmem:[%s4742_s21] sm:$0xff] %vm590_vm2, %v2626_v52  ;;  %v2627_v1 = vadd.f32 %v2611_v48, %v2595_v61  ;;  %v2552_v2 = vadd.f32 %v4725_v14, %v2529_v55  ;;  %v2527_v3 = vmul.f32 %v3325_v56, %v4720_v37 }
 0x341   : > { %2645 = vst.msk [vmem:[%s4742_s21 + $0x18] sm:$0xff] %vm590_vm2, %v2629_v58  ;;  %v2530_v4 = vmul.f32 %v3326_v62, %v4720_v37  ;;  %v2528_v6 = vmul.f32 %v3327_v63, %v4720_v37 }
 0x342   : > { %2643 = vst.msk [vmem:[%s4742_s21 + $0x8] sm:$0xff] %vm590_vm2, %v2627_v1  ;;  %vm2568_vm12 = vcmp.gt.f32.partialorder %v2552_v2, 0.0  ;;  %v2584_v7 = vmul.f32 0.1, %v2552_v2  ;;  %v2550_v9 = vadd.f32 %v4725_v14, %v2527_v3  ;;  %v3314_v53 = vpop.f32.mrb[12].mxu1  ;;  %v2619_v1 = vld [vmem:[%s4326_s0 + $0x48] sm:$0xff] }
 0x343   : > { %v2553_v16 = vadd.f32 %v4725_v14, %v2530_v4  ;;  %v2551_v38 = vadd.f32 %v4725_v14, %v2528_v6  ;;  %v3214_v42 = vpop.f32.mrb[28].mxu0  ;;  %v2469_v43 = vpop.f32.mrb[13].mxu1 }
 0x344   : > { %v2600_v59 = vsel %vm2568_vm12, %v2552_v2, %v2584_v7  ;;  %vm2566_vm13 = vcmp.gt.f32.partialorder %v2550_v9, 0.0  ;;  %v2582_v60 = vmul.f32 0.1, %v2550_v9  ;;  %v3328_v10 = vadd.f32 %v3314_v53, %v3214_v42  ;;  %v1578_v11 = vpop.f32.mrb[29].mxu0  ;;  %v3315_v13 = vpop.f32.mrb[14].mxu1 }
 0x345   : > { %v2632_v15 = vadd.f32 %v2616_v8, %v2600_v59  ;;  %vm2569_vm14 = vcmp.gt.f32.partialorder %v2553_v16, 0.0  ;;  %v2585_v49 = vmul.f32 0.1, %v2553_v16  ;;  %vm2567_vm15 = vcmp.gt.f32.partialorder %v2551_v38, 0.0  ;;  %v3215_v40 = vpop.f32.mrb[30].mxu0  ;;  %v2472_v0 = vpop.f32.mrb[15].mxu1 }
 0x346   : > { %v2598_v17 = vsel %vm2566_vm13, %v2550_v9, %v2582_v60  ;;  %v2583_v18 = vmul.f32 0.1, %v2551_v38  ;;  %v2533_v20 = vmul.f32 %v3328_v10, %v4720_v37  ;;  %v3329_v21 = vadd.f32 %v2469_v43, %v1578_v11  ;;  %v1581_v22 = vpop.f32.mrb[31].mxu0 }
 0x347   : > { %2648 = vst.msk [vmem:[%s4742_s21 + $0x30] sm:$0xff] %vm590_vm2, %v2632_v15  ;;  %v2630_v23 = vadd.f32 %v2614_v12, %v2598_v17  ;;  %v2601_v24 = vsel %vm2569_vm14, %v2553_v16, %v2585_v49  ;;  %v3330_v25 = vadd.f32 %v3315_v13, %v3215_v40  ;;  %v3331_v26 = vadd.f32 %v2472_v0, %v1581_v22  ;;  %v2622_v49 = vld [vmem:[%s4326_s0 + $0x60] sm:$0xff]  ;;  %v2625_v40 = vld [vmem:[%s4326_s0 + $0x78] sm:$0xff] }
 0x348   : > { %v2633_v27 = vadd.f32 %v2617_v5, %v2601_v24  ;;  %v2599_v28 = vsel %vm2567_vm15, %v2551_v38, %v2583_v18  ;;  %v2556_v29 = vadd.f32 %v4725_v14, %v2533_v20  ;;  %v2531_v30 = vmul.f32 %v3329_v21, %v4720_v37  ;;  %v2624_v5 = vld [vmem:[%s4326_s0 + $0x70] sm:$0xff]  ;;  %v2623_v20 = vld [vmem:[%s4326_s0 + $0x68] sm:$0xff]  ;;  %s2659_s0 = scalar_lea.sflag [#allocation5], %s4320_s23 }
 0x349   : > { %2646 = vst.msk [vmem:[%s4742_s21 + $0x20] sm:$0xff] %vm590_vm2, %v2630_v23  ;;  %v2631_v31 = vadd.f32 %v2615_v19, %v2599_v28  ;;  %v2534_v32 = vmul.f32 %v3330_v25, %v4720_v37  ;;  %v2532_v33 = vmul.f32 %v3331_v26, %v4720_v37 }
 0x34a   : > { %2649 = vst.msk [vmem:[%s4742_s21 + $0x38] sm:$0xff] %vm590_vm2, %v2633_v27  ;;  %vm2572_vm1 = vcmp.gt.f32.partialorder %v2556_v29, 0.0  ;;  %v2588_v34 = vmul.f32 0.1, %v2556_v29  ;;  %v2554_v36 = vadd.f32 %v4725_v14, %v2531_v30  ;;  %v3318_v39 = vpop.f32.mrb[16].mxu1 }
 0x34b   : > { %2647 = vst.msk [vmem:[%s4742_s21 + $0x28] sm:$0xff] %vm590_vm2, %v2631_v31  ;;  %v2557_v45 = vadd.f32 %v4725_v14, %v2534_v32  ;;  %v2555_v46 = vadd.f32 %v4725_v14, %v2532_v33  ;;  %v3218_v47 = vpop.f32.mrb[32].mxu0  ;;  %v2485_v41 = vpop.f32.mrb[17].mxu1 }
 0x34c   : > { %v2604_v48 = vsel %vm2572_vm1, %v2556_v29, %v2588_v34  ;;  %vm2570_vm3 = vcmp.gt.f32.partialorder %v2554_v36, 0.0  ;;  %v2586_v50 = vmul.f32 0.1, %v2554_v36  ;;  %v3332_v52 = vadd.f32 %v3318_v39, %v3218_v47  ;;  %v1594_v54 = vpop.f32.mrb[33].mxu0  ;;  %v3319_v55 = vpop.f32.mrb[18].mxu1 }
 0x34d   : > { %v2636_v56 = vadd.f32 %v2620_v35, %v2604_v48  ;;  %vm2573_vm4 = vcmp.gt.f32.partialorder %v2557_v45, 0.0  ;;  %v2589_v57 = vmul.f32 0.1, %v2557_v45  ;;  %vm2571_vm5 = vcmp.gt.f32.partialorder %v2555_v46, 0.0  ;;  %v3219_v58 = vpop.f32.mrb[34].mxu0  ;;  %v2488_v61 = vpop.f32.mrb[19].mxu1 }
 0x34e   : > { %v2602_v62 = vsel %vm2570_vm3, %v2554_v36, %v2586_v50  ;;  %v2587_v63 = vmul.f32 0.1, %v2555_v46  ;;  %v2537_v2 = vmul.f32 %v3332_v52, %v4720_v37  ;;  %v3333_v3 = vadd.f32 %v2485_v41, %v1594_v54  ;;  %v1597_v4 = vpop.f32.mrb[35].mxu0 }
 0x34f   : > { %2652 = vst.msk [vmem:[%s4742_s21 + $0x50] sm:$0xff] %vm590_vm2, %v2636_v56  ;;  %v2634_v6 = vadd.f32 %v2618_v44, %v2602_v62  ;;  %v2605_v7 = vsel %vm2573_vm4, %v2557_v45, %v2589_v57  ;;  %v3334_v8 = vadd.f32 %v3319_v55, %v3219_v58  ;;  %v3335_v9 = vadd.f32 %v2488_v61, %v1597_v4 }
 0x350   : > { %v2637_v53 = vadd.f32 %v2621_v51, %v2605_v7  ;;  %v2603_v12 = vsel %vm2571_vm5, %v2555_v46, %v2587_v63  ;;  %v2560_v16 = vadd.f32 %v4725_v14, %v2537_v2  ;;  %v2535_v38 = vmul.f32 %v3333_v3, %v4720_v37 }
 0x351   : > { %2650 = vst.msk [vmem:[%s4742_s21 + $0x40] sm:$0xff] %vm590_vm2, %v2634_v6  ;;  %v2635_v42 = vadd.f32 %v2619_v1, %v2603_v12  ;;  %v2538_v43 = vmul.f32 %v3334_v8, %v4720_v37  ;;  %v2536_v59 = vmul.f32 %v3335_v9, %v4720_v37 }
 0x352   : > { %2653 = vst.msk [vmem:[%s4742_s21 + $0x58] sm:$0xff] %vm590_vm2, %v2637_v53  ;;  %vm2576_vm6 = vcmp.gt.f32.partialorder %v2560_v16, 0.0  ;;  %v2592_v60 = vmul.f32 0.1, %v2560_v16  ;;  %v2558_v10 = vadd.f32 %v4725_v14, %v2535_v38 }
 0x353   : > { %2651 = vst.msk [vmem:[%s4742_s21 + $0x48] sm:$0xff] %vm590_vm2, %v2635_v42  ;;  %v2561_v11 = vadd.f32 %v4725_v14, %v2538_v43  ;;  %v2559_v13 = vadd.f32 %v4725_v14, %v2536_v59 }
 0x354   : > { %v2608_v15 = vsel %vm2576_vm6, %v2560_v16, %v2592_v60  ;;  %vm2574_vm7 = vcmp.gt.f32.partialorder %v2558_v10, 0.0  ;;  %v2590_v37 = vmul.f32 0.1, %v2558_v10 }
 0x355   : > { %v2640_v0 = vadd.f32 %v2624_v5, %v2608_v15  ;;  %vm2577_vm8 = vcmp.gt.f32.partialorder %v2561_v11, 0.0  ;;  %v2593_v17 = vmul.f32 0.1, %v2561_v11  ;;  %vm2575_vm0 = vcmp.gt.f32.partialorder %v2559_v13, 0.0 }
 0x356   : > { %v2606_v18 = vsel %vm2574_vm7, %v2558_v10, %v2590_v37  ;;  %v2591_v19 = vmul.f32 0.1, %v2559_v13 }
 0x357   : > { %2656 = vst.msk [vmem:[%s4742_s21 + $0x70] sm:$0xff] %vm590_vm2, %v2640_v0  ;;  %v2638_v14 = vadd.f32 %v2622_v49, %v2606_v18  ;;  %v2609_v21 = vsel %vm2577_vm8, %v2561_v11, %v2593_v17 }
 0x358   : > { %v2641_v22 = vadd.f32 %v2625_v40, %v2609_v21  ;;  %v2607_v23 = vsel %vm2575_vm0, %v2559_v13, %v2591_v19 }
 0x359   : > { %2654 = vst.msk [vmem:[%s4742_s21 + $0x60] sm:$0xff] %vm590_vm2, %v2638_v14  ;;  %v2639_v24 = vadd.f32 %v2623_v20, %v2607_v23 }
 0x35a   : > { %2657 = vst.msk [vmem:[%s4742_s21 + $0x78] sm:$0xff] %vm590_vm2, %v2641_v22 }
 0x35b   : > { %2655 = vst.msk [vmem:[%s4742_s21 + $0x68] sm:$0xff] %vm590_vm2, %v2639_v24 }
 0x35c   : > { %3756 = shalt.err (!%p3753_p0)
}
 0x35d   : > { %s3757_s9 = scalar_lea.hbm %s4812_s30, 2048  ;;  %s3761_s14 = scalar_lea.hbm %s5008_s26, 8192 }
 0x35e   : > { %p3758_p9 = scmp.ne.s32.totalorder %s4812_s30, %s3757_s9  ;;  %p3762_p10 = scmp.lt.u32.totalorder %s4812_s30, %s5008_s26 }
 0x35f   : > { %p3763_p7 = scmp.lt.u32.totalorder %s3761_s14, %s3757_s9  ;;  %p3765_p13 = scmp.lt.u32.totalorder %s3757_s9, %s4812_s30 }
 0x360   : > { %p3759_p5 = pnand %p3758_p9, %p5009_p12 }
 0x361   : > { %p3764_p1 = por %p3763_p7, %p3762_p10 }
 0x362   : > { %p3760_p4 = pneg %p3759_p5 }
 0x363   : > { %p3766_p8 = por %p3765_p13, %p3764_p1 }
 0x365   : > { %p3767_p11 = pnand %p3766_p8, %p3760_p4 }
 0x367   : > { %3770 = shalt.err (!%p3767_p11)
}
 0x368   : > { %s3914_s21 = smov 128   ;;  %s3915_s24 = smov 8  }
 0x369   : > { %3458 = dma.vmem_to_hbm [thread:$0]  (%p5009_p12), %s4814_s2, 2048, %s4812_s30, %s2659_s0, %s3914_s21, %s3914_s21, %s3915_s24  }
 0x36a PF: > { %s5010_s28 = sld [smem:[#allocation32_spill]]  ;;  %p3481_p6 = scmp.ge.s32.totalorder %s3901_s22, 2 }
 0x36b   : > { %s2690_s1 = sand.u32 1, %s3873_s15  }
 0x36c   : > { %s2691_s3 = scalar_lea.sflag [#allocation5], %s2690_s1 }
 0x370   : > { %p5011_p2 = scmp.ne.s32.totalorder %s5010_s28, 0 }
 0x372   : > { %p3475_p3 = pnand %p3481_p6, %p5011_p2 }
 0x374   : > { %3844 = dma.done.wait (!%p3475_p3), %s2691_s3, 2048  }
 0x375   : > { %3846 = vsyncadd (!%p3475_p3), %s2691_s3, 4294965248  ;;  %s29_s22 = sadd.s32 1, %s3901_s22   ;;  %s5013_s30 = sld [smem:[#allocation18_spill]] }
 0x376   : > { %p4851_p0 = scmp.ge.s32.totalorder %s29_s22, 6   ;;  %s5014_s10 = sld [smem:[#allocation19_spill]] }
 0x377   : > { %s5015_s29 = sld [smem:[#allocation20_spill]]  ;;  %s5016_s14 = sld [smem:[#allocation30_spill]] }
 0x378   : > { %s5017_s23 = sld [smem:[#allocation21_spill]]  ;;  %s5018_s17 = sld [smem:[#allocation31_spill]] }
 0x379   : > { %s5019_s18 = sld [smem:[#allocation24_spill]]  ;;  %s5020_s19 = sld [smem:[#allocation25_spill]] }
 0x37a   : > { %s5021_s20 = sld [smem:[#allocation26_spill]]  ;;  %s5022_s21 = sld [smem:[#allocation27_spill]] }
 0x37b   : > { %s5023_s11 = smov %s5043_s25  ;;  %s5024_s12 = smov %s3865_s13 }
 0x37c   : > { %s5026_s15 = smov %s3877_s16  ;;  %28 = sbr.rel (!%p4851_p0) target bundleno = 24 (0x18), region = 140 }
 0x37d   : > { %s5025_s13 = smov %s5015_s29 }
 0x37e   : > { %s5027_s16 = smov %s5017_s23 }
 0x383   :  { %2696 = vsyncpa [#allocation4], 1 }
 0x384   :  { %2698 = vsyncpa [#allocation4 + $0x1], 1 }
 0x385   :  { %2699 = vsyncpa [#allocation7], 1 }
 0x386   :  { %2701 = vsyncpa [#allocation7 + $0x1], 1 }
 0x387   :  { %2702 = vsyncpa [#allocation10], 1 }
 0x388   :  { %2703 = vsyncpa [#allocation5], 1 }
 0x389   :  { %2705 = vsyncpa [#allocation5 + $0x1], 1 }

</bundles_post_ra>
